<compile_context>
chip_gen: v7x
topology: tpu7x:2x2x1
jax: 0.10.0
libtpu: 0.0.40
codegen_flags: <defaults>
</compile_context>

<pallas_src>
import math
import functools

import jax
import jax.numpy as jnp
from jax.experimental import pallas as pl
from jax.experimental.pallas import tpu as pltpu

LN_EPS = 1e-12


# ----------------------------- in-kernel helpers ----------------------------------
def _gelu(x):
    # exact (erf) GELU, matching torch's gelu
    return 0.5 * x * (1.0 + jax.lax.erf(x / math.sqrt(2.0)))


def _layernorm(x, g, b, eps=LN_EPS):
    mu = jnp.mean(x, axis=-1, keepdims=True)
    var = jnp.mean(jnp.square(x - mu), axis=-1, keepdims=True)
    return (x - mu) * jax.lax.rsqrt(var + eps) * g + b


# ------------------------- the single fused TempCLIP kernel ------------------------
# grid = (L,): layer axis only ("arbitrary"); batch is collapsed into the block.
# Scratch x_acc (B*S, D) holds the resident activations across all layers.
def _tempclip_kernel(video_ref, mask_ref, lin_w_ref, embv_ref, pos_ref,
                     wqkv_ref, bqkv_ref, wo_ref, w1_ref, b1_ref, w2_ref, vecd_ref,
                     sw1_ref, sb1_ref, sw2_ref, sb2_ref, vpw_ref, vpb_ref,
                     fusion_ref, fatt_ref,
                     x_acc, *, num_heads, batch):
    l = pl.program_id(0)

    # ---- prologue (l == 0): fused video embedding --------------------------------
    # linear_video -> GELU -> LayerNorm -> + positional emb (broadcast over B) -> LayerNorm
    @pl.when(l == 0)
    def _():
        y = jnp.dot(video_ref[...], lin_w_ref[...],
                    preferred_element_type=jnp.float32) + embv_ref[0:1, :]
        y = _layernorm(_gelu(y), embv_ref[1:2, :], embv_ref[2:3, :])
        rows, d = y.shape
        y = (y.reshape(batch, rows // batch, d) + pos_ref[...][None]).reshape(rows, d)
        x_acc[...] = _layernorm(y, embv_ref[3:4, :], embv_ref[4:5, :])

    # ---- one BERT encoder layer ---------------------------------------------------
    x = x_acc[...]                                   # (B*S, D) resident activations
    BS, D = x.shape
    S = BS // batch
    dh = D // num_heads
    scale = 1.0 / math.sqrt(dh)

    # mask bias (mask stays resident in VMEM; recomputing is 2 VPU ops on B*S floats)
    bias = ((1.0 - mask_ref[...]) * -10000.0)[:, None, :]          # (B, 1, S)

    vecd = vecd_ref[0]                               # (6, D): bo, ln1_g, ln1_b, b2, ln2_g, ln2_b
    bo, ln1_g, ln1_b = vecd[0:1], vecd[1:2], vecd[2:3]
    b2, ln2_g, ln2_b = vecd[3:4], vecd[4:5], vecd[5:6]

    # fused QKV projection: one (B*S, D) x (D, 3D) MXU matmul
    qkv = jnp.dot(x, wqkv_ref[0], preferred_element_type=jnp.float32) + bqkv_ref[0]
    q3 = qkv[:, 0:D].reshape(batch, S, D)
    k3 = qkv[:, D:2 * D].reshape(batch, S, D)
    v3 = qkv[:, 2 * D:3 * D].reshape(batch, S, D)

    # per-head attention; assemble head contexts in vregs (single concatenate)
    ctx_heads = []
    for h in range(num_heads):
        sl = slice(h * dh, (h + 1) * dh)
        s = jnp.einsum("bqd,bkd->bqk", q3[..., sl], k3[..., sl],
                       preferred_element_type=jnp.float32) * scale + bias
        s = s - jnp.max(s, axis=-1, keepdims=True)
        p = jnp.exp(s)
        p = p * pl.reciprocal(jnp.sum(p, axis=-1, keepdims=True), approx=True)
        ctx_heads.append(jnp.einsum("bqk,bkd->bqd", p, v3[..., sl],
                                    preferred_element_type=jnp.float32))
    ctx = jnp.concatenate(ctx_heads, axis=-1).reshape(BS, D)

    attn_out = jnp.dot(ctx, wo_ref[0], preferred_element_type=jnp.float32) + bo
    h1 = _layernorm(attn_out + x, ln1_g, ln1_b)

    ff = _gelu(jnp.dot(h1, w1_ref[0], preferred_element_type=jnp.float32) + b1_ref[0])
    ff = jnp.dot(ff, w2_ref[0], preferred_element_type=jnp.float32) + b2
    x_new = _layernorm(ff + h1, ln2_g, ln2_b)
    x_acc[...] = x_new

    # ---- epilogue (l == last): frame-attention pool + weighted sum + vpos_proj ----
    @pl.when(l == pl.num_programs(0) - 1)
    def _():
        hh = jnp.tanh(jnp.dot(x_new, sw1_ref[...],
                              preferred_element_type=jnp.float32) + sb1_ref[...])
        logits = jnp.dot(hh, sw2_ref[...],
                         preferred_element_type=jnp.float32) + sb2_ref[...]   # (B*S, 1)
        l3 = logits.reshape(batch, S, 1)
        e = jnp.exp(l3 - jnp.max(l3, axis=1, keepdims=True))
        fatt = e / jnp.sum(e, axis=1, keepdims=True)   # exact divide: user-visible output
        fatt_ref[...] = fatt                           # (B, S, 1)

        x3 = x_new.reshape(batch, S, D)
        g = jnp.sum(x3 * fatt, axis=1)                 # (B, D)
        fusion_ref[...] = jnp.dot(g, vpw_ref[...],
                                  preferred_element_type=jnp.float32) + vpb_ref[...]


# ----------------------------- parameter packing -----------------------------------
def pack_tempclip_params(params):
    """One-time host-side packing of per-layer weights into stacked tensors."""
    layers = params["layers"]
    stk = lambda name: jnp.stack([lp[name] for lp in layers], axis=0)
    return {
        "video_lin_w": params["lin_v_w"],
        # rows: [lin_v_b, norm_v_g, norm_v_b, pos_ln_g, pos_ln_b]
        "embed_vecs": jnp.concatenate([params["lin_v_b"], params["norm_v_g"],
                                       params["norm_v_b"], params["pos_ln_g"],
                                       params["pos_ln_b"]], axis=0),          # (5, D)
        "pos_emb": params["pos_emb"],                                         # (T, D)
        "wqkv": jnp.concatenate([stk("wq"), stk("wk"), stk("wv")], axis=-1),  # (L, D, 3D)
        "bqkv": jnp.concatenate([stk("bq"), stk("bk"), stk("bv")], axis=-1),  # (L, 1, 3D)
        "wo": stk("wo"),                                                      # (L, D, D)
        "w1": stk("w1"), "b1": stk("b1"), "w2": stk("w2"),                    # (L,D,DFF)/(L,1,DFF)/(L,DFF,D)
        # rows: [bo, ln1_g, ln1_b, b2, ln2_g, ln2_b]
        "vec_d": jnp.concatenate([stk("bo"), stk("ln1_g"), stk("ln1_b"),
                                  stk("b2"), stk("ln2_g"), stk("ln2_b")], axis=1),  # (L, 6, D)
        "satt_w1": params["satt_w1"], "satt_b1": params["satt_b1"],
        "satt_w2": params["satt_w2"], "satt_b2": params["satt_b2"],
        "vproj_w": params["vproj_w"], "vproj_b": params["vproj_b"],
    }


# ----------------------------- fused forward wrapper --------------------------------
def tempclip_fused_forward(packed, video, video_mask, cfg):
    B, T, F = video.shape
    D, DFF = cfg["d_model"], cfg["d_ff"]
    L, H = cfg["num_layers"], cfg["num_heads"]
    Dh = D // 2
    S = T

    const = lambda *shape: pl.BlockSpec(shape, lambda l: (0,) * len(shape))
    layer = lambda r, c: pl.BlockSpec((1, r, c), lambda l: (l, 0, 0))

    kernel = functools.partial(_tempclip_kernel, num_heads=H, batch=B)

    fusion, fatt = pl.pallas_call(
        kernel,
        out_shape=(jax.ShapeDtypeStruct((B, D), jnp.float32),
                   jax.ShapeDtypeStruct((B, T, 1), jnp.float32)),
        grid=(L,),
        in_specs=[
            const(B * T, F),        # video rows (DMA'd once; block index constant)
            const(B, S),            # video mask
            const(F, D),            # linear_video weight
            const(5, D),            # packed embedding vectors
            const(T, D),            # positional embedding
            layer(D, 3 * D),        # wqkv  (per-layer)
            layer(1, 3 * D),        # bqkv
            layer(D, D),            # wo
            layer(D, DFF),          # w1
            layer(1, DFF),          # b1
            layer(DFF, D),          # w2
            layer(6, D),            # packed per-layer (1, D) vectors
            const(D, Dh),           # satt_w1
            const(1, Dh),           # satt_b1
            const(Dh, 1),           # satt_w2
            const(1, 1),            # satt_b2
            const(D, D),            # vproj_w
            const(1, D),            # vproj_b
        ],
        out_specs=(pl.BlockSpec((B, D), lambda l: (0, 0)),
                   pl.BlockSpec((B, T, 1), lambda l: (0, 0, 0))),
        scratch_shapes=[pltpu.VMEM((B * T, D), jnp.float32)],   # resident activations
        compiler_params=pltpu.CompilerParams(dimension_semantics=("arbitrary",)),
    )(video.reshape(B * T, F), video_mask.astype(jnp.float32),
      packed["video_lin_w"], packed["embed_vecs"], packed["pos_emb"],
      packed["wqkv"], packed["bqkv"], packed["wo"],
      packed["w1"], packed["b1"], packed["w2"], packed["vec_d"],
      packed["satt_w1"], packed["satt_b1"], packed["satt_w2"], packed["satt_b2"],
      packed["vproj_w"], packed["vproj_b"])

    return fusion, fatt


# ----------------------------- parameter construction ------------------------------
def sinusoidal_pos_emb(n_pos, dim):
    pos = jnp.arange(n_pos, dtype=jnp.float32)[:, None]
    j = jnp.arange(dim, dtype=jnp.float32)[None, :]
    angle = pos / jnp.power(10000.0, (2.0 * jnp.floor(j / 2.0)) / dim)
    return jnp.where((jnp.arange(dim)[None, :] % 2) == 0, jnp.sin(angle), jnp.cos(angle))


def init_params(key, cfg):
    std = 0.02  # initializer_range
    D, F, DFF, T = cfg["d_model"], cfg["feature_dim"], cfg["d_ff"], cfg["max_feats"]

    def nrm(k, shape):
        return std * jax.random.normal(k, shape, dtype=jnp.float32)

    keys = iter(jax.random.split(key, 64))
    p = {
        "lin_v_w": nrm(next(keys), (F, D)), "lin_v_b": jnp.zeros((1, D), jnp.float32),
        "norm_v_g": jnp.ones((1, D), jnp.float32), "norm_v_b": jnp.zeros((1, D), jnp.float32),
        "pos_emb": sinusoidal_pos_emb(T, D),
        "pos_ln_g": jnp.ones((1, D), jnp.float32), "pos_ln_b": jnp.zeros((1, D), jnp.float32),
        "layers": [],
        # satt_pool_frame
        "satt_w1": nrm(next(keys), (D, D // 2)), "satt_b1": jnp.zeros((1, D // 2), jnp.float32),
        "satt_w2": nrm(next(keys), (D // 2, 1)), "satt_b2": jnp.zeros((1, 1), jnp.float32),
        # vpos_proj (Dropout is identity in eval)
        "vproj_w": nrm(next(keys), (D, D)), "vproj_b": jnp.zeros((1, D), jnp.float32),
        # simplified LanModel
        "lm_embed": nrm(next(keys), (cfg["vocab"], D)),
        "lm_proj_w": nrm(next(keys), (D, D)), "lm_proj_b": jnp.zeros((D,), jnp.float32),
    }
    for _ in range(cfg["num_layers"]):
        layer = {
            "wq": nrm(next(keys), (D, D)), "bq": jnp.zeros((1, D), jnp.float32),
            "wk": nrm(next(keys), (D, D)), "bk": jnp.zeros((1, D), jnp.float32),
            "wv": nrm(next(keys), (D, D)), "bv": jnp.zeros((1, D), jnp.float32),
            "wo": nrm(next(keys), (D, D)), "bo": jnp.zeros((1, D), jnp.float32),
            "ln1_g": jnp.ones((1, D), jnp.float32), "ln1_b": jnp.zeros((1, D), jnp.float32),
            "w1": nrm(next(keys), (D, DFF)), "b1": jnp.zeros((1, DFF), jnp.float32),
            "w2": nrm(next(keys), (DFF, D)), "b2": jnp.zeros((1, D), jnp.float32),
            "ln2_g": jnp.ones((1, D), jnp.float32), "ln2_b": jnp.zeros((1, D), jnp.float32),
        }
        p["layers"].append(layer)
    return p


# ----------------------------- full forward (Pallas path) --------------------------
def tempclip_forward(params, packed, video, video_mask, answer_tokens, cfg):
    # TODO(synk): LanModel wraps a pretrained BERT/RoBERTa; replaced here by a
    # deterministic embedding + mean-pool + linear projection (plain-JAX glue).
    emb = params["lm_embed"][answer_tokens]                              # (B, A, L, D)
    answer_g = jnp.mean(emb, axis=2) @ params["lm_proj_w"] + params["lm_proj_b"]

    # embed -> all BERT layers -> frame-pool -> vpos_proj, all in ONE pallas_call.
    fusion_proj, fatt = tempclip_fused_forward(packed, video, video_mask, cfg)
    return fusion_proj, answer_g, {"fatt": fatt}


# ----------------------------- pure-JAX reference ----------------------------------
def reference_forward(params, video, video_mask, answer_tokens, cfg):
    emb = params["lm_embed"][answer_tokens]
    answer_g = jnp.mean(emb, axis=2) @ params["lm_proj_w"] + params["lm_proj_b"]

    y = video @ params["lin_v_w"] + params["lin_v_b"]
    y = _gelu(y)
    y = _layernorm(y, params["norm_v_g"], params["norm_v_b"])
    x = _layernorm(y + params["pos_emb"][None], params["pos_ln_g"], params["pos_ln_b"])

    mask_bias = (1.0 - video_mask[:, None, :]) * -10000.0
    H = cfg["num_heads"]
    D = cfg["d_model"]
    dh = D // H
    for lp in params["layers"]:
        q = x @ lp["wq"] + lp["bq"]
        k = x @ lp["wk"] + lp["bk"]
        v = x @ lp["wv"] + lp["bv"]
        ctxs = []
        for h in range(H):
            sl = slice(h * dh, (h + 1) * dh)
            s = jnp.einsum("bqd,bkd->bqk", q[..., sl], k[..., sl]) / math.sqrt(dh) + mask_bias
            p = jax.nn.softmax(s, axis=-1)
            ctxs.append(jnp.einsum("bqk,bkd->bqd", p, v[..., sl]))
        ctx = jnp.concatenate(ctxs, axis=-1)
        a = ctx @ lp["wo"] + lp["bo"]
        h1 = _layernorm(a + x, lp["ln1_g"], lp["ln1_b"])
        ff = _gelu(h1 @ lp["w1"] + lp["b1"]) @ lp["w2"] + lp["b2"]
        x = _layernorm(ff + h1, lp["ln2_g"], lp["ln2_b"])

    hh = jnp.tanh(x @ params["satt_w1"] + params["satt_b1"])
    logits = hh @ params["satt_w2"] + params["satt_b2"]
    fatt = jax.nn.softmax(logits, axis=-2)
    gfeat = jnp.sum(x * fatt, axis=1)
    fusion = gfeat @ params["vproj_w"] + params["vproj_b"]
    return fusion, answer_g, {"fatt": fatt}


# ----------------------------- main -------------------------------------------------
if __name__ == "__main__":
    cfg = {
        "d_model": 32,
        "d_ff": 64,
        "num_heads": 2,
        "num_layers": 2,
        "feature_dim": 48,
        "max_feats": 8,
        "vocab": 100,
    }
    B, T, F = 2, cfg["max_feats"], cfg["feature_dim"]
    N_ANS, ANS_LEN = 4, 6

    key = jax.random.PRNGKey(0)
    k_param, k_vid, k_ans = jax.random.split(key, 3)

    params = init_params(k_param, cfg)
    packed = pack_tempclip_params(params)          # one-time host-side weight packing
    video = jax.random.normal(k_vid, (B, T, F), dtype=jnp.float32)
    video_mask = jnp.ones((B, T), jnp.float32).at[1, -2:].set(0.0)
    answer_tokens = jax.random.randint(k_ans, (B, N_ANS, ANS_LEN), 0, cfg["vocab"])

    fusion_proj, answer_g, outs = tempclip_forward(params, packed, video, video_mask,
                                                   answer_tokens, cfg)
    jax.block_until_ready(fusion_proj)

    ref_fusion, ref_ans_g, ref_outs = reference_forward(params, video, video_mask,
                                                        answer_tokens, cfg)

    assert fusion_proj.shape == (B, cfg["d_model"])
    assert outs["fatt"].shape == (B, T, 1)
    # tolerance 2e-3: attention softmax denominators use the EUP approximate reciprocal
    # in-kernel (the final fatt normalization itself uses an exact divide).
    assert jnp.allclose(fusion_proj, ref_fusion, atol=2e-3, rtol=2e-3)
    assert jnp.allclose(outs["fatt"], ref_outs["fatt"], atol=2e-3, rtol=2e-3)
    assert jnp.allclose(answer_g, ref_ans_g, atol=2e-4, rtol=2e-4)

    print("KERNEL_OK")
</pallas_src>

<mosaic_0001>
module attributes {stable_mosaic.version = 11 : i64} {
  func.func @_tempclip_kernel(%arg0: i32, %arg1: memref<16x48xf32, #tpu.memory_space<vmem>>, %arg2: memref<2x8xf32, #tpu.memory_space<vmem>>, %arg3: memref<48x32xf32, #tpu.memory_space<vmem>>, %arg4: memref<5x32xf32, #tpu.memory_space<vmem>>, %arg5: memref<8x32xf32, #tpu.memory_space<vmem>>, %arg6: memref<1x32x96xf32, #tpu.memory_space<vmem>>, %arg7: memref<1x1x96xf32, #tpu.memory_space<vmem>>, %arg8: memref<1x32x32xf32, #tpu.memory_space<vmem>>, %arg9: memref<1x32x64xf32, #tpu.memory_space<vmem>>, %arg10: memref<1x1x64xf32, #tpu.memory_space<vmem>>, %arg11: memref<1x64x32xf32, #tpu.memory_space<vmem>>, %arg12: memref<1x6x32xf32, #tpu.memory_space<vmem>>, %arg13: memref<32x16xf32, #tpu.memory_space<vmem>>, %arg14: memref<1x16xf32, #tpu.memory_space<vmem>>, %arg15: memref<16x1xf32, #tpu.memory_space<vmem>>, %arg16: memref<1x1xf32, #tpu.memory_space<vmem>>, %arg17: memref<32x32xf32, #tpu.memory_space<vmem>>, %arg18: memref<1x32xf32, #tpu.memory_space<vmem>>, %arg19: memref<2x32xf32, #tpu.memory_space<vmem>>, %arg20: memref<2x8x1xf32, #tpu.memory_space<vmem>>, %arg21: memref<16x32xf32, #tpu.memory_space<vmem>>) attributes {dimension_semantics = [#tpu.dimension_semantics<arbitrary>], iteration_bounds = array<i64: 2>, scalar_prefetch = 0 : i64, scratch_operands = 1 : i64, tpu.core_type = #tpu.core_type<tc>, window_params = [{pipeline_mode = #tpu.pipeline_mode<synchronous>, transform_indices = @transform_0, window_bounds = array<i64: 16, 48>}, {pipeline_mode = #tpu.pipeline_mode<synchronous>, transform_indices = @transform_1, window_bounds = array<i64: 2, 8>}, {pipeline_mode = #tpu.pipeline_mode<synchronous>, transform_indices = @transform_2, window_bounds = array<i64: 48, 32>}, {pipeline_mode = #tpu.pipeline_mode<synchronous>, transform_indices = @transform_3, window_bounds = array<i64: 5, 32>}, {pipeline_mode = #tpu.pipeline_mode<synchronous>, transform_indices = @transform_4, window_bounds = array<i64: 8, 32>}, {transform_indices = @transform_5, window_bounds = array<i64: 1, 32, 96>}, {transform_indices = @transform_6, window_bounds = array<i64: 1, 1, 96>}, {transform_indices = @transform_7, window_bounds = array<i64: 1, 32, 32>}, {transform_indices = @transform_8, window_bounds = array<i64: 1, 32, 64>}, {transform_indices = @transform_9, window_bounds = array<i64: 1, 1, 64>}, {transform_indices = @transform_10, window_bounds = array<i64: 1, 64, 32>}, {transform_indices = @transform_11, window_bounds = array<i64: 1, 6, 32>}, {pipeline_mode = #tpu.pipeline_mode<synchronous>, transform_indices = @transform_12, window_bounds = array<i64: 32, 16>}, {pipeline_mode = #tpu.pipeline_mode<synchronous>, transform_indices = @transform_13, window_bounds = array<i64: 1, 16>}, {pipeline_mode = #tpu.pipeline_mode<synchronous>, transform_indices = @transform_14, window_bounds = array<i64: 16, 1>}, {pipeline_mode = #tpu.pipeline_mode<synchronous>, transform_indices = @transform_15, window_bounds = array<i64: 1, 1>}, {pipeline_mode = #tpu.pipeline_mode<synchronous>, transform_indices = @transform_16, window_bounds = array<i64: 32, 32>}, {pipeline_mode = #tpu.pipeline_mode<synchronous>, transform_indices = @transform_17, window_bounds = array<i64: 1, 32>}, {pipeline_mode = #tpu.pipeline_mode<synchronous>, transform_indices = @transform_18, window_bounds = array<i64: 2, 32>}, {pipeline_mode = #tpu.pipeline_mode<synchronous>, transform_indices = @transform_19, window_bounds = array<i64: 2, 8, 1>}]} {
    %c0_i32 = arith.constant 0 : i32
    %0 = arith.cmpi eq, %arg0, %c0_i32 : i32
    %1 = arith.extui %0 : i1 to i32
    %c0_i32_0 = arith.constant 0 : i32
    %2 = arith.cmpi ne, %1, %c0_i32_0 : i32
    scf.if %2 {
      %c0_56 = arith.constant 0 : index
      %c0_57 = arith.constant 0 : index
      %146 = vector.load %arg1[%c0_56, %c0_57] : memref<16x48xf32, #tpu.memory_space<vmem>>, vector<16x48xf32>
      %c0_58 = arith.constant 0 : index
      %c0_59 = arith.constant 0 : index
      %147 = vector.load %arg3[%c0_58, %c0_59] : memref<48x32xf32, #tpu.memory_space<vmem>>, vector<48x32xf32>
      %cst_60 = arith.constant dense<0.000000e+00> : vector<16x32xf32>
      %148 = tpu.matmul %146, %147, %cst_60 {dimension_numbers = #tpu.dot_dimension_numbers<[1], [0], [0], [1], [0, 0, 1, 1], [], []>} : vector<16x48xf32>, vector<48x32xf32>, vector<16x32xf32> -> vector<16x32xf32>
      %c0_61 = arith.constant 0 : index
      %c0_62 = arith.constant 0 : index
      %149 = vector.load %arg4[%c0_61, %c0_62] : memref<5x32xf32, #tpu.memory_space<vmem>>, vector<1x32xf32>
      %150 = vector.broadcast %149 : vector<1x32xf32> to vector<16x32xf32>
      %151 = arith.addf %148, %150 : vector<16x32xf32>
      %cst_63 = arith.constant 5.000000e-01 : f32
      %152 = vector.broadcast %cst_63 : f32 to vector<16x32xf32>
      %153 = arith.mulf %152, %151 : vector<16x32xf32>
      %cst_64 = arith.constant 1.41421354 : f32
      %154 = vector.broadcast %cst_64 : f32 to vector<16x32xf32>
      %155 = arith.divf %151, %154 : vector<16x32xf32>
      %156 = math.erf %155 : vector<16x32xf32>
      %cst_65 = arith.constant 1.000000e+00 : f32
      %157 = vector.broadcast %cst_65 : f32 to vector<16x32xf32>
      %158 = arith.addf %157, %156 : vector<16x32xf32>
      %159 = arith.mulf %153, %158 : vector<16x32xf32>
      %c1 = arith.constant 1 : index
      %c0_66 = arith.constant 0 : index
      %160 = vector.load %arg4[%c1, %c0_66] : memref<5x32xf32, #tpu.memory_space<vmem>>, vector<1x32xf32>
      %c2 = arith.constant 2 : index
      %c0_67 = arith.constant 0 : index
      %161 = vector.load %arg4[%c2, %c0_67] : memref<5x32xf32, #tpu.memory_space<vmem>>, vector<1x32xf32>
      %cst_68 = arith.constant dense<0.000000e+00> : vector<16xf32>
      %162 = vector.multi_reduction <add>, %159, %cst_68 [1] : vector<16x32xf32> to vector<16xf32>
      %163 = vector.shape_cast %162 : vector<16xf32> to vector<16x1xf32>
      %cst_69 = arith.constant 3.200000e+01 : f32
      %164 = vector.broadcast %cst_69 : f32 to vector<16x1xf32>
      %165 = arith.divf %163, %164 : vector<16x1xf32>
      %166 = vector.broadcast %165 : vector<16x1xf32> to vector<16x32xf32>
      %167 = arith.subf %159, %166 : vector<16x32xf32>
      %168 = arith.mulf %167, %167 : vector<16x32xf32>
      %cst_70 = arith.constant dense<0.000000e+00> : vector<16xf32>
      %169 = vector.multi_reduction <add>, %168, %cst_70 [1] : vector<16x32xf32> to vector<16xf32>
      %170 = vector.shape_cast %169 : vector<16xf32> to vector<16x1xf32>
      %cst_71 = arith.constant 3.200000e+01 : f32
      %171 = vector.broadcast %cst_71 : f32 to vector<16x1xf32>
      %172 = arith.divf %170, %171 : vector<16x1xf32>
      %173 = vector.broadcast %165 : vector<16x1xf32> to vector<16x32xf32>
      %174 = arith.subf %159, %173 : vector<16x32xf32>
      %cst_72 = arith.constant 9.99999996E-13 : f32
      %175 = vector.broadcast %cst_72 : f32 to vector<16x1xf32>
      %176 = arith.addf %172, %175 : vector<16x1xf32>
      %177 = math.rsqrt %176 : vector<16x1xf32>
      %178 = vector.broadcast %177 : vector<16x1xf32> to vector<16x32xf32>
      %179 = arith.mulf %174, %178 : vector<16x32xf32>
      %180 = vector.broadcast %160 : vector<1x32xf32> to vector<16x32xf32>
      %181 = arith.mulf %179, %180 : vector<16x32xf32>
      %182 = vector.broadcast %161 : vector<1x32xf32> to vector<16x32xf32>
      %183 = arith.addf %181, %182 : vector<16x32xf32>
      %184 = vector.shape_cast %183 : vector<16x32xf32> to vector<2x8x32xf32>
      %c0_73 = arith.constant 0 : index
      %c0_74 = arith.constant 0 : index
      %185 = vector.load %arg5[%c0_73, %c0_74] : memref<8x32xf32, #tpu.memory_space<vmem>>, vector<8x32xf32>
      %186 = vector.shape_cast %185 : vector<8x32xf32> to vector<1x8x32xf32>
      %187 = vector.broadcast %186 : vector<1x8x32xf32> to vector<2x8x32xf32>
      %188 = arith.addf %184, %187 : vector<2x8x32xf32>
      %189 = vector.shape_cast %188 : vector<2x8x32xf32> to vector<16x32xf32>
      %c3 = arith.constant 3 : index
      %c0_75 = arith.constant 0 : index
      %190 = vector.load %arg4[%c3, %c0_75] : memref<5x32xf32, #tpu.memory_space<vmem>>, vector<1x32xf32>
      %c4 = arith.constant 4 : index
      %c0_76 = arith.constant 0 : index
      %191 = vector.load %arg4[%c4, %c0_76] : memref<5x32xf32, #tpu.memory_space<vmem>>, vector<1x32xf32>
      %cst_77 = arith.constant dense<0.000000e+00> : vector<16xf32>
      %192 = vector.multi_reduction <add>, %189, %cst_77 [1] : vector<16x32xf32> to vector<16xf32>
      %193 = vector.shape_cast %192 : vector<16xf32> to vector<16x1xf32>
      %cst_78 = arith.constant 3.200000e+01 : f32
      %194 = vector.broadcast %cst_78 : f32 to vector<16x1xf32>
      %195 = arith.divf %193, %194 : vector<16x1xf32>
      %196 = vector.broadcast %195 : vector<16x1xf32> to vector<16x32xf32>
      %197 = arith.subf %189, %196 : vector<16x32xf32>
      %198 = arith.mulf %197, %197 : vector<16x32xf32>
      %cst_79 = arith.constant dense<0.000000e+00> : vector<16xf32>
      %199 = vector.multi_reduction <add>, %198, %cst_79 [1] : vector<16x32xf32> to vector<16xf32>
      %200 = vector.shape_cast %199 : vector<16xf32> to vector<16x1xf32>
      %cst_80 = arith.constant 3.200000e+01 : f32
      %201 = vector.broadcast %cst_80 : f32 to vector<16x1xf32>
      %202 = arith.divf %200, %201 : vector<16x1xf32>
      %203 = vector.broadcast %195 : vector<16x1xf32> to vector<16x32xf32>
      %204 = arith.subf %189, %203 : vector<16x32xf32>
      %cst_81 = arith.constant 9.99999996E-13 : f32
      %205 = vector.broadcast %cst_81 : f32 to vector<16x1xf32>
      %206 = arith.addf %202, %205 : vector<16x1xf32>
      %207 = math.rsqrt %206 : vector<16x1xf32>
      %208 = vector.broadcast %207 : vector<16x1xf32> to vector<16x32xf32>
      %209 = arith.mulf %204, %208 : vector<16x32xf32>
      %210 = vector.broadcast %190 : vector<1x32xf32> to vector<16x32xf32>
      %211 = arith.mulf %209, %210 : vector<16x32xf32>
      %212 = vector.broadcast %191 : vector<1x32xf32> to vector<16x32xf32>
      %213 = arith.addf %211, %212 : vector<16x32xf32>
      %c0_82 = arith.constant 0 : index
      %c0_83 = arith.constant 0 : index
      %214 = vector.load %arg21[%c0_82, %c0_83] : memref<16x32xf32, #tpu.memory_space<vmem>>, vector<16x32xf32>
      tpu.vector_store %arg21[%c0_82, %c0_83], %213 {strides = array<i32>} : memref<16x32xf32, #tpu.memory_space<vmem>>, vector<16x32xf32>,
    } else {
    }
    %c0 = arith.constant 0 : index
    %c0_1 = arith.constant 0 : index
    %3 = vector.load %arg21[%c0, %c0_1] : memref<16x32xf32, #tpu.memory_space<vmem>>, vector<16x32xf32>
    %c0_2 = arith.constant 0 : index
    %c0_3 = arith.constant 0 : index
    %4 = vector.load %arg2[%c0_2, %c0_3] : memref<2x8xf32, #tpu.memory_space<vmem>>, vector<2x8xf32>
    %cst = arith.constant 1.000000e+00 : f32
    %5 = vector.broadcast %cst : f32 to vector<2x8xf32>
    %6 = arith.subf %5, %4 : vector<2x8xf32>
    %cst_4 = arith.constant -1.000000e+04 : f32
    %7 = vector.broadcast %cst_4 : f32 to vector<2x8xf32>
    %8 = arith.mulf %6, %7 : vector<2x8xf32>
    %9 = vector.shape_cast %8 : vector<2x8xf32> to vector<2x1x8xf32>
    %c0_5 = arith.constant 0 : index
    %c0_6 = arith.constant 0 : index
    %c0_7 = arith.constant 0 : index
    %10 = vector.load %arg12[%c0_5, %c0_6, %c0_7] : memref<1x6x32xf32, #tpu.memory_space<vmem>>, vector<1x6x32xf32>
    %11 = vector.shape_cast %10 : vector<1x6x32xf32> to vector<6x32xf32>
    %12 = vector.extract_strided_slice %11 {offsets = [0, 0], sizes = [1, 32], strides = [1, 1]} : vector<6x32xf32> to vector<1x32xf32>
    %13 = vector.extract_strided_slice %11 {offsets = [1, 0], sizes = [1, 32], strides = [1, 1]} : vector<6x32xf32> to vector<1x32xf32>
    %14 = vector.extract_strided_slice %11 {offsets = [2, 0], sizes = [1, 32], strides = [1, 1]} : vector<6x32xf32> to vector<1x32xf32>
    %15 = vector.extract_strided_slice %11 {offsets = [3, 0], sizes = [1, 32], strides = [1, 1]} : vector<6x32xf32> to vector<1x32xf32>
    %16 = vector.extract_strided_slice %11 {offsets = [4, 0], sizes = [1, 32], strides = [1, 1]} : vector<6x32xf32> to vector<1x32xf32>
    %17 = vector.extract_strided_slice %11 {offsets = [5, 0], sizes = [1, 32], strides = [1, 1]} : vector<6x32xf32> to vector<1x32xf32>
    %c0_8 = arith.constant 0 : index
    %c0_9 = arith.constant 0 : index
    %c0_10 = arith.constant 0 : index
    %18 = vector.load %arg6[%c0_8, %c0_9, %c0_10] : memref<1x32x96xf32, #tpu.memory_space<vmem>>, vector<1x32x96xf32>
    %19 = vector.shape_cast %18 : vector<1x32x96xf32> to vector<32x96xf32>
    %cst_11 = arith.constant dense<0.000000e+00> : vector<16x96xf32>
    %20 = tpu.matmul %3, %19, %cst_11 {dimension_numbers = #tpu.dot_dimension_numbers<[1], [0], [0], [1], [0, 0, 1, 1], [], []>} : vector<16x32xf32>, vector<32x96xf32>, vector<16x96xf32> -> vector<16x96xf32>
    %c0_12 = arith.constant 0 : index
    %c0_13 = arith.constant 0 : index
    %c0_14 = arith.constant 0 : index
    %21 = vector.load %arg7[%c0_12, %c0_13, %c0_14] : memref<1x1x96xf32, #tpu.memory_space<vmem>>, vector<1x1x96xf32>
    %22 = vector.shape_cast %21 : vector<1x1x96xf32> to vector<1x96xf32>
    %23 = vector.broadcast %22 : vector<1x96xf32> to vector<16x96xf32>
    %24 = arith.addf %20, %23 : vector<16x96xf32>
    %25 = vector.extract_strided_slice %24 {offsets = [0, 0], sizes = [16, 32], strides = [1, 1]} : vector<16x96xf32> to vector<16x32xf32>
    %26 = vector.shape_cast %25 : vector<16x32xf32> to vector<2x8x32xf32>
    %27 = vector.extract_strided_slice %24 {offsets = [0, 32], sizes = [16, 32], strides = [1, 1]} : vector<16x96xf32> to vector<16x32xf32>
    %28 = vector.shape_cast %27 : vector<16x32xf32> to vector<2x8x32xf32>
    %29 = vector.extract_strided_slice %24 {offsets = [0, 64], sizes = [16, 32], strides = [1, 1]} : vector<16x96xf32> to vector<16x32xf32>
    %30 = vector.shape_cast %29 : vector<16x32xf32> to vector<2x8x32xf32>
    %31 = vector.extract_strided_slice %26 {offsets = [0, 0, 0], sizes = [2, 8, 16], strides = [1, 1, 1]} : vector<2x8x32xf32> to vector<2x8x16xf32>
    %32 = vector.extract_strided_slice %28 {offsets = [0, 0, 0], sizes = [2, 8, 16], strides = [1, 1, 1]} : vector<2x8x32xf32> to vector<2x8x16xf32>
    "tpu.trace_start"() <{level = 10 : i32, message = "bqd,bkd->bqk"}> : () -> ()
    %cst_15 = arith.constant dense<0.000000e+00> : vector<2x8x8xf32>
    %33 = tpu.matmul %31, %32, %cst_15 {dimension_numbers = #tpu.dot_dimension_numbers<[2], [2], [1], [1], [0, 0, 0, 1, 1, 1], [0], [0]>} : vector<2x8x16xf32>, vector<2x8x16xf32>, vector<2x8x8xf32> -> vector<2x8x8xf32>
    "tpu.trace_stop"() : () -> ()
    %cst_16 = arith.constant 2.500000e-01 : f32
    %34 = vector.broadcast %cst_16 : f32 to vector<2x8x8xf32>
    %35 = arith.mulf %33, %34 : vector<2x8x8xf32>
    %36 = vector.broadcast %9 : vector<2x1x8xf32> to vector<2x8x8xf32>
    %37 = arith.addf %35, %36 : vector<2x8x8xf32>
    %cst_17 = arith.constant dense<0xFF800000> : vector<2x8xf32>
    %38 = vector.multi_reduction <maximumf>, %37, %cst_17 [2] : vector<2x8x8xf32> to vector<2x8xf32>
    %39 = vector.shape_cast %38 : vector<2x8xf32> to vector<2x8x1xf32>
    %40 = vector.broadcast %39 : vector<2x8x1xf32> to vector<2x8x8xf32>
    %41 = arith.subf %37, %40 : vector<2x8x8xf32>
    %42 = math.exp %41 : vector<2x8x8xf32>
    %cst_18 = arith.constant dense<0.000000e+00> : vector<2x8xf32>
    %43 = vector.multi_reduction <add>, %42, %cst_18 [2] : vector<2x8x8xf32> to vector<2x8xf32>
    %44 = vector.shape_cast %43 : vector<2x8xf32> to vector<2x8x1xf32>
    %45 = tpu.reciprocal %44 {approx = true} : vector<2x8x1xf32> -> vector<2x8x1xf32>
    %46 = vector.broadcast %45 : vector<2x8x1xf32> to vector<2x8x8xf32>
    %47 = arith.mulf %42, %46 : vector<2x8x8xf32>
    %48 = vector.extract_strided_slice %30 {offsets = [0, 0, 0], sizes = [2, 8, 16], strides = [1, 1, 1]} : vector<2x8x32xf32> to vector<2x8x16xf32>
    "tpu.trace_start"() <{level = 10 : i32, message = "bqk,bkd->bqd"}> : () -> ()
    %cst_19 = arith.constant dense<0.000000e+00> : vector<2x8x16xf32>
    %49 = tpu.matmul %47, %48, %cst_19 {dimension_numbers = #tpu.dot_dimension_numbers<[2], [1], [1], [2], [0, 0, 0, 1, 1, 2], [0], [0]>} : vector<2x8x8xf32>, vector<2x8x16xf32>, vector<2x8x16xf32> -> vector<2x8x16xf32>
    "tpu.trace_stop"() : () -> ()
    %50 = vector.extract_strided_slice %26 {offsets = [0, 0, 16], sizes = [2, 8, 16], strides = [1, 1, 1]} : vector<2x8x32xf32> to vector<2x8x16xf32>
    %51 = vector.extract_strided_slice %28 {offsets = [0, 0, 16], sizes = [2, 8, 16], strides = [1, 1, 1]} : vector<2x8x32xf32> to vector<2x8x16xf32>
    "tpu.trace_start"() <{level = 10 : i32, message = "bqd,bkd->bqk"}> : () -> ()
    %cst_20 = arith.constant dense<0.000000e+00> : vector<2x8x8xf32>
    %52 = tpu.matmul %50, %51, %cst_20 {dimension_numbers = #tpu.dot_dimension_numbers<[2], [2], [1], [1], [0, 0, 0, 1, 1, 1], [0], [0]>} : vector<2x8x16xf32>, vector<2x8x16xf32>, vector<2x8x8xf32> -> vector<2x8x8xf32>
    "tpu.trace_stop"() : () -> ()
    %cst_21 = arith.constant 2.500000e-01 : f32
    %53 = vector.broadcast %cst_21 : f32 to vector<2x8x8xf32>
    %54 = arith.mulf %52, %53 : vector<2x8x8xf32>
    %55 = vector.broadcast %9 : vector<2x1x8xf32> to vector<2x8x8xf32>
    %56 = arith.addf %54, %55 : vector<2x8x8xf32>
    %cst_22 = arith.constant dense<0xFF800000> : vector<2x8xf32>
    %57 = vector.multi_reduction <maximumf>, %56, %cst_22 [2] : vector<2x8x8xf32> to vector<2x8xf32>
    %58 = vector.shape_cast %57 : vector<2x8xf32> to vector<2x8x1xf32>
    %59 = vector.broadcast %58 : vector<2x8x1xf32> to vector<2x8x8xf32>
    %60 = arith.subf %56, %59 : vector<2x8x8xf32>
    %61 = math.exp %60 : vector<2x8x8xf32>
    %cst_23 = arith.constant dense<0.000000e+00> : vector<2x8xf32>
    %62 = vector.multi_reduction <add>, %61, %cst_23 [2] : vector<2x8x8xf32> to vector<2x8xf32>
    %63 = vector.shape_cast %62 : vector<2x8xf32> to vector<2x8x1xf32>
    %64 = tpu.reciprocal %63 {approx = true} : vector<2x8x1xf32> -> vector<2x8x1xf32>
    %65 = vector.broadcast %64 : vector<2x8x1xf32> to vector<2x8x8xf32>
    %66 = arith.mulf %61, %65 : vector<2x8x8xf32>
    %67 = vector.extract_strided_slice %30 {offsets = [0, 0, 16], sizes = [2, 8, 16], strides = [1, 1, 1]} : vector<2x8x32xf32> to vector<2x8x16xf32>
    "tpu.trace_start"() <{level = 10 : i32, message = "bqk,bkd->bqd"}> : () -> ()
    %cst_24 = arith.constant dense<0.000000e+00> : vector<2x8x16xf32>
    %68 = tpu.matmul %66, %67, %cst_24 {dimension_numbers = #tpu.dot_dimension_numbers<[2], [1], [1], [2], [0, 0, 0, 1, 1, 2], [0], [0]>} : vector<2x8x8xf32>, vector<2x8x16xf32>, vector<2x8x16xf32> -> vector<2x8x16xf32>
    "tpu.trace_stop"() : () -> ()
    %69 = tpu.concatenate %49, %68 in 2 : vector<2x8x16xf32>, vector<2x8x16xf32> -> vector<2x8x32xf32>
    %70 = vector.shape_cast %69 : vector<2x8x32xf32> to vector<16x32xf32>
    %c0_25 = arith.constant 0 : index
    %c0_26 = arith.constant 0 : index
    %c0_27 = arith.constant 0 : index
    %71 = vector.load %arg8[%c0_25, %c0_26, %c0_27] : memref<1x32x32xf32, #tpu.memory_space<vmem>>, vector<1x32x32xf32>
    %72 = vector.shape_cast %71 : vector<1x32x32xf32> to vector<32x32xf32>
    %cst_28 = arith.constant dense<0.000000e+00> : vector<16x32xf32>
    %73 = tpu.matmul %70, %72, %cst_28 {dimension_numbers = #tpu.dot_dimension_numbers<[1], [0], [0], [1], [0, 0, 1, 1], [], []>} : vector<16x32xf32>, vector<32x32xf32>, vector<16x32xf32> -> vector<16x32xf32>
    %74 = vector.broadcast %12 : vector<1x32xf32> to vector<16x32xf32>
    %75 = arith.addf %73, %74 : vector<16x32xf32>
    %76 = arith.addf %75, %3 : vector<16x32xf32>
    %cst_29 = arith.constant dense<0.000000e+00> : vector<16xf32>
    %77 = vector.multi_reduction <add>, %76, %cst_29 [1] : vector<16x32xf32> to vector<16xf32>
    %78 = vector.shape_cast %77 : vector<16xf32> to vector<16x1xf32>
    %cst_30 = arith.constant 3.200000e+01 : f32
    %79 = vector.broadcast %cst_30 : f32 to vector<16x1xf32>
    %80 = arith.divf %78, %79 : vector<16x1xf32>
    %81 = vector.broadcast %80 : vector<16x1xf32> to vector<16x32xf32>
    %82 = arith.subf %76, %81 : vector<16x32xf32>
    %83 = arith.mulf %82, %82 : vector<16x32xf32>
    %cst_31 = arith.constant dense<0.000000e+00> : vector<16xf32>
    %84 = vector.multi_reduction <add>, %83, %cst_31 [1] : vector<16x32xf32> to vector<16xf32>
    %85 = vector.shape_cast %84 : vector<16xf32> to vector<16x1xf32>
    %cst_32 = arith.constant 3.200000e+01 : f32
    %86 = vector.broadcast %cst_32 : f32 to vector<16x1xf32>
    %87 = arith.divf %85, %86 : vector<16x1xf32>
    %88 = vector.broadcast %80 : vector<16x1xf32> to vector<16x32xf32>
    %89 = arith.subf %76, %88 : vector<16x32xf32>
    %cst_33 = arith.constant 9.99999996E-13 : f32
    %90 = vector.broadcast %cst_33 : f32 to vector<16x1xf32>
    %91 = arith.addf %87, %90 : vector<16x1xf32>
    %92 = math.rsqrt %91 : vector<16x1xf32>
    %93 = vector.broadcast %92 : vector<16x1xf32> to vector<16x32xf32>
    %94 = arith.mulf %89, %93 : vector<16x32xf32>
    %95 = vector.broadcast %13 : vector<1x32xf32> to vector<16x32xf32>
    %96 = arith.mulf %94, %95 : vector<16x32xf32>
    %97 = vector.broadcast %14 : vector<1x32xf32> to vector<16x32xf32>
    %98 = arith.addf %96, %97 : vector<16x32xf32>
    %c0_34 = arith.constant 0 : index
    %c0_35 = arith.constant 0 : index
    %c0_36 = arith.constant 0 : index
    %99 = vector.load %arg9[%c0_34, %c0_35, %c0_36] : memref<1x32x64xf32, #tpu.memory_space<vmem>>, vector<1x32x64xf32>
    %100 = vector.shape_cast %99 : vector<1x32x64xf32> to vector<32x64xf32>
    %cst_37 = arith.constant dense<0.000000e+00> : vector<16x64xf32>
    %101 = tpu.matmul %98, %100, %cst_37 {dimension_numbers = #tpu.dot_dimension_numbers<[1], [0], [0], [1], [0, 0, 1, 1], [], []>} : vector<16x32xf32>, vector<32x64xf32>, vector<16x64xf32> -> vector<16x64xf32>
    %c0_38 = arith.constant 0 : index
    %c0_39 = arith.constant 0 : index
    %c0_40 = arith.constant 0 : index
    %102 = vector.load %arg10[%c0_38, %c0_39, %c0_40] : memref<1x1x64xf32, #tpu.memory_space<vmem>>, vector<1x1x64xf32>
    %103 = vector.shape_cast %102 : vector<1x1x64xf32> to vector<1x64xf32>
    %104 = vector.broadcast %103 : vector<1x64xf32> to vector<16x64xf32>
    %105 = arith.addf %101, %104 : vector<16x64xf32>
    %cst_41 = arith.constant 5.000000e-01 : f32
    %106 = vector.broadcast %cst_41 : f32 to vector<16x64xf32>
    %107 = arith.mulf %106, %105 : vector<16x64xf32>
    %cst_42 = arith.constant 1.41421354 : f32
    %108 = vector.broadcast %cst_42 : f32 to vector<16x64xf32>
    %109 = arith.divf %105, %108 : vector<16x64xf32>
    %110 = math.erf %109 : vector<16x64xf32>
    %cst_43 = arith.constant 1.000000e+00 : f32
    %111 = vector.broadcast %cst_43 : f32 to vector<16x64xf32>
    %112 = arith.addf %111, %110 : vector<16x64xf32>
    %113 = arith.mulf %107, %112 : vector<16x64xf32>
    %c0_44 = arith.constant 0 : index
    %c0_45 = arith.constant 0 : index
    %c0_46 = arith.constant 0 : index
    %114 = vector.load %arg11[%c0_44, %c0_45, %c0_46] : memref<1x64x32xf32, #tpu.memory_space<vmem>>, vector<1x64x32xf32>
    %115 = vector.shape_cast %114 : vector<1x64x32xf32> to vector<64x32xf32>
    %cst_47 = arith.constant dense<0.000000e+00> : vector<16x32xf32>
    %116 = tpu.matmul %113, %115, %cst_47 {dimension_numbers = #tpu.dot_dimension_numbers<[1], [0], [0], [1], [0, 0, 1, 1], [], []>} : vector<16x64xf32>, vector<64x32xf32>, vector<16x32xf32> -> vector<16x32xf32>
    %117 = vector.broadcast %15 : vector<1x32xf32> to vector<16x32xf32>
    %118 = arith.addf %116, %117 : vector<16x32xf32>
    %119 = arith.addf %118, %98 : vector<16x32xf32>
    %cst_48 = arith.constant dense<0.000000e+00> : vector<16xf32>
    %120 = vector.multi_reduction <add>, %119, %cst_48 [1] : vector<16x32xf32> to vector<16xf32>
    %121 = vector.shape_cast %120 : vector<16xf32> to vector<16x1xf32>
    %cst_49 = arith.constant 3.200000e+01 : f32
    %122 = vector.broadcast %cst_49 : f32 to vector<16x1xf32>
    %123 = arith.divf %121, %122 : vector<16x1xf32>
    %124 = vector.broadcast %123 : vector<16x1xf32> to vector<16x32xf32>
    %125 = arith.subf %119, %124 : vector<16x32xf32>
    %126 = arith.mulf %125, %125 : vector<16x32xf32>
    %cst_50 = arith.constant dense<0.000000e+00> : vector<16xf32>
    %127 = vector.multi_reduction <add>, %126, %cst_50 [1] : vector<16x32xf32> to vector<16xf32>
    %128 = vector.shape_cast %127 : vector<16xf32> to vector<16x1xf32>
    %cst_51 = arith.constant 3.200000e+01 : f32
    %129 = vector.broadcast %cst_51 : f32 to vector<16x1xf32>
    %130 = arith.divf %128, %129 : vector<16x1xf32>
    %131 = vector.broadcast %123 : vector<16x1xf32> to vector<16x32xf32>
    %132 = arith.subf %119, %131 : vector<16x32xf32>
    %cst_52 = arith.constant 9.99999996E-13 : f32
    %133 = vector.broadcast %cst_52 : f32 to vector<16x1xf32>
    %134 = arith.addf %130, %133 : vector<16x1xf32>
    %135 = math.rsqrt %134 : vector<16x1xf32>
    %136 = vector.broadcast %135 : vector<16x1xf32> to vector<16x32xf32>
    %137 = arith.mulf %132, %136 : vector<16x32xf32>
    %138 = vector.broadcast %16 : vector<1x32xf32> to vector<16x32xf32>
    %139 = arith.mulf %137, %138 : vector<16x32xf32>
    %140 = vector.broadcast %17 : vector<1x32xf32> to vector<16x32xf32>
    %141 = arith.addf %139, %140 : vector<16x32xf32>
    %c0_53 = arith.constant 0 : index
    %c0_54 = arith.constant 0 : index
    %142 = vector.load %arg21[%c0_53, %c0_54] : memref<16x32xf32, #tpu.memory_space<vmem>>, vector<16x32xf32>
    tpu.vector_store %arg21[%c0_53, %c0_54], %141 {strides = array<i32>} : memref<16x32xf32, #tpu.memory_space<vmem>>, vector<16x32xf32>,
    %c1_i32 = arith.constant 1 : i32
    %143 = arith.cmpi eq, %arg0, %c1_i32 : i32
    %144 = arith.extui %143 : i1 to i32
    %c0_i32_55 = arith.constant 0 : i32
    %145 = arith.cmpi ne, %144, %c0_i32_55 : i32
    scf.if %145 {
      %c0_56 = arith.constant 0 : index
      %c0_57 = arith.constant 0 : index
      %146 = vector.load %arg13[%c0_56, %c0_57] : memref<32x16xf32, #tpu.memory_space<vmem>>, vector<32x16xf32>
      %cst_58 = arith.constant dense<0.000000e+00> : vector<16x16xf32>
      %147 = tpu.matmul %141, %146, %cst_58 {dimension_numbers = #tpu.dot_dimension_numbers<[1], [0], [0], [1], [0, 0, 1, 1], [], []>} : vector<16x32xf32>, vector<32x16xf32>, vector<16x16xf32> -> vector<16x16xf32>
      %c0_59 = arith.constant 0 : index
      %c0_60 = arith.constant 0 : index
      %148 = vector.load %arg14[%c0_59, %c0_60] : memref<1x16xf32, #tpu.memory_space<vmem>>, vector<1x16xf32>
      %149 = vector.broadcast %148 : vector<1x16xf32> to vector<16x16xf32>
      %150 = arith.addf %147, %149 : vector<16x16xf32>
      %151 = math.tanh %150 : vector<16x16xf32>
      %c0_61 = arith.constant 0 : index
      %c0_62 = arith.constant 0 : index
      %152 = vector.load %arg15[%c0_61, %c0_62] : memref<16x1xf32, #tpu.memory_space<vmem>>, vector<16x1xf32>
      %cst_63 = arith.constant dense<0.000000e+00> : vector<16x1xf32>
      %153 = tpu.matmul %151, %152, %cst_63 {dimension_numbers = #tpu.dot_dimension_numbers<[1], [0], [0], [1], [0, 0, 1, 1], [], []>} : vector<16x16xf32>, vector<16x1xf32>, vector<16x1xf32> -> vector<16x1xf32>
      %c0_64 = arith.constant 0 : index
      %c0_65 = arith.constant 0 : index
      %154 = vector.load %arg16[%c0_64, %c0_65] : memref<1x1xf32, #tpu.memory_space<vmem>>, vector<1x1xf32>
      %155 = vector.broadcast %154 : vector<1x1xf32> to vector<16x1xf32>
      %156 = arith.addf %153, %155 : vector<16x1xf32>
      %157 = vector.shape_cast %156 : vector<16x1xf32> to vector<2x8x1xf32>
      %cst_66 = arith.constant dense<0xFF800000> : vector<2x1xf32>
      %158 = vector.multi_reduction <maximumf>, %157, %cst_66 [1] : vector<2x8x1xf32> to vector<2x1xf32>
      %159 = vector.shape_cast %158 : vector<2x1xf32> to vector<2x1x1xf32>
      %160 = vector.broadcast %159 : vector<2x1x1xf32> to vector<2x8x1xf32>
      %161 = arith.subf %157, %160 : vector<2x8x1xf32>
      %162 = math.exp %161 : vector<2x8x1xf32>
      %cst_67 = arith.constant dense<0.000000e+00> : vector<2x1xf32>
      %163 = vector.multi_reduction <add>, %162, %cst_67 [1] : vector<2x8x1xf32> to vector<2x1xf32>
      %164 = vector.shape_cast %163 : vector<2x1xf32> to vector<2x1x1xf32>
      %165 = vector.broadcast %164 : vector<2x1x1xf32> to vector<2x8x1xf32>
      %166 = arith.divf %162, %165 : vector<2x8x1xf32>
      %c0_68 = arith.constant 0 : index
      %c0_69 = arith.constant 0 : index
      %c0_70 = arith.constant 0 : index
      %167 = vector.load %arg20[%c0_68, %c0_69, %c0_70] : memref<2x8x1xf32, #tpu.memory_space<vmem>>, vector<2x8x1xf32>
      tpu.vector_store %arg20[%c0_68, %c0_69, %c0_70], %166 {strides = array<i32>} : memref<2x8x1xf32, #tpu.memory_space<vmem>>, vector<2x8x1xf32>,
      %168 = vector.shape_cast %141 : vector<16x32xf32> to vector<2x8x32xf32>
      %169 = vector.broadcast %166 : vector<2x8x1xf32> to vector<2x8x32xf32>
      %170 = arith.mulf %168, %169 : vector<2x8x32xf32>
      %cst_71 = arith.constant dense<0.000000e+00> : vector<2x32xf32>
      %171 = vector.multi_reduction <add>, %170, %cst_71 [1] : vector<2x8x32xf32> to vector<2x32xf32>
      %c0_72 = arith.constant 0 : index
      %c0_73 = arith.constant 0 : index
      %172 = vector.load %arg17[%c0_72, %c0_73] : memref<32x32xf32, #tpu.memory_space<vmem>>, vector<32x32xf32>
      %cst_74 = arith.constant dense<0.000000e+00> : vector<2x32xf32>
      %173 = tpu.matmul %171, %172, %cst_74 {dimension_numbers = #tpu.dot_dimension_numbers<[1], [0], [0], [1], [0, 0, 1, 1], [], []>} : vector<2x32xf32>, vector<32x32xf32>, vector<2x32xf32> -> vector<2x32xf32>
      %c0_75 = arith.constant 0 : index
      %c0_76 = arith.constant 0 : index
      %174 = vector.load %arg18[%c0_75, %c0_76] : memref<1x32xf32, #tpu.memory_space<vmem>>, vector<1x32xf32>
      %175 = vector.broadcast %174 : vector<1x32xf32> to vector<2x32xf32>
      %176 = arith.addf %173, %175 : vector<2x32xf32>
      %c0_77 = arith.constant 0 : index
      %c0_78 = arith.constant 0 : index
      %177 = vector.load %arg19[%c0_77, %c0_78] : memref<2x32xf32, #tpu.memory_space<vmem>>, vector<2x32xf32>
      tpu.vector_store %arg19[%c0_77, %c0_78], %176 {strides = array<i32>} : memref<2x32xf32, #tpu.memory_space<vmem>>, vector<2x32xf32>,
    } else {
    }
    return
  }
  func.func @transform_0(%arg0: i32) -> (i32, i32) {
    %c0_i32 = arith.constant 0 : i32
    %c0_i32_0 = arith.constant 0 : i32
    %c0_i32_1 = arith.constant 0 : i32
    return %c0_i32, %c0_i32_0 : i32, i32
  }
  func.func @transform_1(%arg0: i32) -> (i32, i32) {
    %c0_i32 = arith.constant 0 : i32
    %c0_i32_0 = arith.constant 0 : i32
    %c0_i32_1 = arith.constant 0 : i32
    return %c0_i32, %c0_i32_0 : i32, i32
  }
  func.func @transform_2(%arg0: i32) -> (i32, i32) {
    %c0_i32 = arith.constant 0 : i32
    %c0_i32_0 = arith.constant 0 : i32
    %c0_i32_1 = arith.constant 0 : i32
    return %c0_i32, %c0_i32_0 : i32, i32
  }
  func.func @transform_3(%arg0: i32) -> (i32, i32) {
    %c0_i32 = arith.constant 0 : i32
    %c0_i32_0 = arith.constant 0 : i32
    %c0_i32_1 = arith.constant 0 : i32
    return %c0_i32, %c0_i32_0 : i32, i32
  }
  func.func @transform_4(%arg0: i32) -> (i32, i32) {
    %c0_i32 = arith.constant 0 : i32
    %c0_i32_0 = arith.constant 0 : i32
    %c0_i32_1 = arith.constant 0 : i32
    return %c0_i32, %c0_i32_0 : i32, i32
  }
  func.func @transform_5(%arg0: i32) -> (i32, i32, i32) {
    %c0_i32 = arith.constant 0 : i32
    %c0_i32_0 = arith.constant 0 : i32
    %c0_i32_1 = arith.constant 0 : i32
    return %arg0, %c0_i32, %c0_i32_0 : i32, i32, i32
  }
  func.func @transform_6(%arg0: i32) -> (i32, i32, i32) {
    %c0_i32 = arith.constant 0 : i32
    %c0_i32_0 = arith.constant 0 : i32
    %c0_i32_1 = arith.constant 0 : i32
    return %arg0, %c0_i32, %c0_i32_0 : i32, i32, i32
  }
  func.func @transform_7(%arg0: i32) -> (i32, i32, i32) {
    %c0_i32 = arith.constant 0 : i32
    %c0_i32_0 = arith.constant 0 : i32
    %c0_i32_1 = arith.constant 0 : i32
    return %arg0, %c0_i32, %c0_i32_0 : i32, i32, i32
  }
  func.func @transform_8(%arg0: i32) -> (i32, i32, i32) {
    %c0_i32 = arith.constant 0 : i32
    %c0_i32_0 = arith.constant 0 : i32
    %c0_i32_1 = arith.constant 0 : i32
    return %arg0, %c0_i32, %c0_i32_0 : i32, i32, i32
  }
  func.func @transform_9(%arg0: i32) -> (i32, i32, i32) {
    %c0_i32 = arith.constant 0 : i32
    %c0_i32_0 = arith.constant 0 : i32
    %c0_i32_1 = arith.constant 0 : i32
    return %arg0, %c0_i32, %c0_i32_0 : i32, i32, i32
  }
  func.func @transform_10(%arg0: i32) -> (i32, i32, i32) {
    %c0_i32 = arith.constant 0 : i32
    %c0_i32_0 = arith.constant 0 : i32
    %c0_i32_1 = arith.constant 0 : i32
    return %arg0, %c0_i32, %c0_i32_0 : i32, i32, i32
  }
  func.func @transform_11(%arg0: i32) -> (i32, i32, i32) {
    %c0_i32 = arith.constant 0 : i32
    %c0_i32_0 = arith.constant 0 : i32
    %c0_i32_1 = arith.constant 0 : i32
    return %arg0, %c0_i32, %c0_i32_0 : i32, i32, i32
  }
  func.func @transform_12(%arg0: i32) -> (i32, i32) {
    %c0_i32 = arith.constant 0 : i32
    %c0_i32_0 = arith.constant 0 : i32
    %c0_i32_1 = arith.constant 0 : i32
    return %c0_i32, %c0_i32_0 : i32, i32
  }
  func.func @transform_13(%arg0: i32) -> (i32, i32) {
    %c0_i32 = arith.constant 0 : i32
    %c0_i32_0 = arith.constant 0 : i32
    %c0_i32_1 = arith.constant 0 : i32
    return %c0_i32, %c0_i32_0 : i32, i32
  }
  func.func @transform_14(%arg0: i32) -> (i32, i32) {
    %c0_i32 = arith.constant 0 : i32
    %c0_i32_0 = arith.constant 0 : i32
    %c0_i32_1 = arith.constant 0 : i32
    return %c0_i32, %c0_i32_0 : i32, i32
  }
  func.func @transform_15(%arg0: i32) -> (i32, i32) {
    %c0_i32 = arith.constant 0 : i32
    %c0_i32_0 = arith.constant 0 : i32
    %c0_i32_1 = arith.constant 0 : i32
    return %c0_i32, %c0_i32_0 : i32, i32
  }
  func.func @transform_16(%arg0: i32) -> (i32, i32) {
    %c0_i32 = arith.constant 0 : i32
    %c0_i32_0 = arith.constant 0 : i32
    %c0_i32_1 = arith.constant 0 : i32
    return %c0_i32, %c0_i32_0 : i32, i32
  }
  func.func @transform_17(%arg0: i32) -> (i32, i32) {
    %c0_i32 = arith.constant 0 : i32
    %c0_i32_0 = arith.constant 0 : i32
    %c0_i32_1 = arith.constant 0 : i32
    return %c0_i32, %c0_i32_0 : i32, i32
  }
  func.func @transform_18(%arg0: i32) -> (i32, i32) {
    %c0_i32 = arith.constant 0 : i32
    %c0_i32_0 = arith.constant 0 : i32
    %c0_i32_1 = arith.constant 0 : i32
    return %c0_i32, %c0_i32_0 : i32, i32
  }
  func.func @transform_19(%arg0: i32) -> (i32, i32, i32) {
    %c0_i32 = arith.constant 0 : i32
    %c0_i32_0 = arith.constant 0 : i32
    %c0_i32_1 = arith.constant 0 : i32
    %c0_i32_2 = arith.constant 0 : i32
    return %c0_i32, %c0_i32_0, %c0_i32_1 : i32, i32, i32
  }
}

</mosaic_0001>

<bundles_post_ra>
// kernel: tpu_custom_call.1
= control target key start
LH: loop header
LB: loop body
LE: loop exit
PB: predicated region body
PF: predicated region fallthrough
CT: control target
= control target key end

     0   :  { %s3454_s0 = inlined_call_operand.vmem [shape: f32[16,48], index: 0, kind: input, shape index: {}]   ;;  %s3455_s1 = inlined_call_operand.vmem [shape: f32[2,8], index: 1, kind: input, shape index: {}]   ;;  %s3456_s2 = inlined_call_operand.vmem [shape: f32[48,32], index: 2, kind: input, shape index: {}]   ;;  %s3457_s3 = inlined_call_operand.vmem [shape: f32[5,32], index: 3, kind: input, shape index: {}]   ;;  %s3458_s4 = inlined_call_operand.vmem [shape: f32[8,32], index: 4, kind: input, shape index: {}]   ;;  %s3459_s5 = inlined_call_operand.vmem [shape: f32[2,32,96], index: 5, kind: input, shape index: {}]   ;;  %s3460_s6 = inlined_call_operand.vmem [shape: f32[2,1,96], index: 6, kind: input, shape index: {}]   ;;  %s3461_s7 = inlined_call_operand.vmem [shape: f32[2,32,32], index: 7, kind: input, shape index: {}]   ;;  %s3462_s8 = inlined_call_operand.vmem [shape: f32[2,32,64], index: 8, kind: input, shape index: {}]   ;;  %s3463_s9 = inlined_call_operand.vmem [shape: f32[2,1,64], index: 9, kind: input, shape index: {}]   ;;  %s3464_s10 = inlined_call_operand.vmem [shape: f32[2,64,32], index: 10, kind: input, shape index: {}]   ;;  %s3465_s11 = inlined_call_operand.vmem [shape: f32[2,6,32], index: 11, kind: input, shape index: {}]   ;;  %s3466_s12 = inlined_call_operand.vmem [shape: f32[32,16], index: 12, kind: input, shape index: {}]   ;;  %s3467_s13 = inlined_call_operand.vmem [shape: f32[1,16], index: 13, kind: input, shape index: {}]   ;;  %s3468_s14 = inlined_call_operand.vmem [shape: f32[16,1], index: 14, kind: input, shape index: {}]   ;;  %s3469_s15 = inlined_call_operand.<no memory space> [shape: f32[1,1], index: 15, kind: input, shape index: {}]   ;;  %s3470_s16 = inlined_call_operand.vmem [shape: f32[32,32], index: 16, kind: input, shape index: {}]   ;;  %s3471_s17 = inlined_call_operand.vmem [shape: f32[1,32], index: 17, kind: input, shape index: {}]   ;;  %s3472_s18 = inlined_call_operand.hbm [shape: f32[2,32], index: 18, kind: output, shape index: {0}]   ;;  %s3473_s19 = inlined_call_operand.vmem [shape: f32[2,8,1], index: 19, kind: output, shape index: {1}]  }
   0x1   :  { %3479 = sst [smem:[#allocation8_spill]] %s3454_s0  ;;  %v25_v0 = vstv %s3469_s15 }
   0x2   :  { %3480 = sst [smem:[#allocation9_spill]] %s3455_s1  ;;  %26 = vst [vmem:[#allocation3] sm:$0x1] %v25_v0 }
   0x3   :  { %3481 = sst [smem:[#allocation10_spill]] %s3456_s2 }
   0x4   :  { %3482 = sst [smem:[#allocation11_spill]] %s3457_s3 }
   0x5   :  { %3483 = sst [smem:[#allocation12_spill]] %s3459_s5 }
   0x6   :  { %3484 = sst [smem:[#allocation13_spill]] %s3461_s7 }
   0x7   :  { %3485 = sst [smem:[#allocation14_spill]] %s3471_s17 }
   0x8   :  { %3486 = sst [smem:[#allocation15_spill]] %s3472_s18 }
   0x9   :  { %27 = vsyncpa [#allocation5], 0  ;;  %s3101_s20 = smov 0  }
   0xa LB: > { %3487 = sst [smem:[#allocation7_spill]] %s2982_s20  ;;  %s3107_s21 = sadd.s32 4294967295, %s2982_s20   ;;  %s2982_s20 = sphi %s3101_s20, %s33_s20  }
   0xb   : > { %p2535_p0 = scmp.ge.s32.totalorder %s2982_s20, 1  ;;  %p588_p1 = scmp.lt.s32.totalorder %s2982_s20, 3 }
   0xd   : > { %p589_p2 = pnand %p2535_p0, %p588_p1 }
   0xe   : > { %p664_p3 = scmp.lt.s32.totalorder (!%p589_p2), %s3107_s21, 1  ;;  %s3488_s5 = sld [smem:[#allocation12_spill]] (!%p589_p2) }
   0xf   : > { %592 = sbr.rel (%p589_p2) target bundleno = 4837 (0x12e5), region = 92  ;;  %s3489_s7 = sld [smem:[#allocation13_spill]] (!%p589_p2) }
  0x10   : > { %p2545_p4 = scmp.ne.s32.totalorder (!%p589_p2), %s3107_s21, 0 }
  0x16   : > { %s3113_s15 = scalar_select %p664_p3, %s3107_s21, 1 }
  0x17   : > { %697 = sbr.rel (%p2545_p4) target bundleno = 909 (0x38d), region = 96  ;;  %s3490_s0 = sld [smem:[#allocation10_spill]] (!%p2545_p4)  ;;  %vm711_vm0 = vcmask (!%p2545_p4), 392192   ;;  %vm806_vm1 = vcmask (!%p2545_p4), 261120   ;;  %v846_v51 = vld [vmem:[%s3458_s4] sm:$0xff] (!%p2545_p4) }
  0x18   : > { %s2588_s1 = sshll.u32 %s3113_s15, 5  ;;  %s2591_s2 = sshll.u32 %s3113_s15, 6 }
  0x19   : > { %s3123_s3 = scalar_lea.vmem %s3488_s5, %s2588_s1  ;;  %s3128_s28 = scalar_lea.vmem %s3489_s7, %s2588_s1 }
  0x1a   : > { %s3133_s30 = scalar_lea.vmem %s3462_s8, %s2588_s1  ;;  %s2544_s23 = sshll.u32 %s3113_s15, 3 }
  0x1b   : > { %s3144_s25 = scalar_lea.vmem %s3464_s10, %s2591_s2  ;;  %s3149_s27 = scalar_lea.vmem %s3465_s11, %s2544_s23 }
  0x1c   : > { %s3491_s20 = sld [smem:[#allocation8_spill]] (!%p2545_p4)  ;;  %s3493_s2 = sld [smem:[#allocation11_spill]] (!%p2545_p4) }
  0x1d   : > { %v700_v1 = vld [vmem:[%s3490_s0] sm:$0xff] (!%p2545_p4)  ;;  %v701_v2 = vld [vmem:[%s3490_s0 + $0x8] sm:$0xff] (!%p2545_p4)  ;;  %v702_v3 = vld [vmem:[%s3490_s0 + $0x10] sm:$0xff] (!%p2545_p4) }
  0x1e   : > { %v2795_v4 = vpack.c.bf16 %v701_v2, %v700_v1  ;;  %v703_v5 = vld [vmem:[%s3490_s0 + $0x18] sm:$0xff]  ;;  %v704_v7 = vld [vmem:[%s3490_s0 + $0x20] sm:$0xff]  ;;  %v705_v8 = vld [vmem:[%s3490_s0 + $0x28] sm:$0xff] }
  0x1f   : > { %v2799_v6 = vpack.c.bf16 %v703_v5, %v702_v3  ;;  %v2803_v10 = vpack.c.bf16 %v705_v8, %v704_v7 }
  0x20   : > { %2796 = vmatprep.subr.bf16.mxu0 %v2795_v4 }
  0x21   : > { %2798 = vmatpush3.bf16.msra.mxu0 %v2795_v4 }
  0x22   : > { %s3492_s7 = smov %s3491_s20  ;;  %v698_v9 = vld [vmem:[%s3491_s20] sm:$0xff]  ;;  %2800 = vmatprep.subr.bf16.mxu0 %v2799_v6 }
  0x23   : > { %2671 = vmatprep.mubr.msk.f32.mxu0 %vm711_vm0, %v698_v9  ;;  %v699_v11 = vld [vmem:[%s3492_s7 + $0x8] sm:$0xff]  ;;  %v2546_v12 = vld [vmem:[%s3493_s2] ss:$0 sm:$0xff]  ;;  %v2549_v46 = vld [vmem:[%s3493_s2 + $0x1] ss:$0 sm:$0xff] }
  0x24   : > { %v2550_v48 = vld [vmem:[%s3493_s2 + $0x2] ss:$0 sm:$0xff] }
  0x25   : > { %2802 = vmatpush3.bf16.msra.mxu0 %v2799_v6 }
  0x26   : > { %2804 = vmatprep.subr.bf16.mxu0 %v2803_v10 }
  0x29   : > { %2806 = vmatpush3.bf16.msra.mxu0 %v2803_v10 }
  0x2c   : > { %2672 = vmatmul.mubr.msk.f32.vlgmr.msra.gmra.mrb[0].mxu0 %vm711_vm0, %v699_v11 }
  0xff   : > { %v2673_v13 = vpop.f32.mrb[0].mxu0 }
 0x100   : > { %v790_v14 = vadd.f32 %v2673_v13, %v2546_v12  ;;  %v784_v15 = vpop.f32.mrb[1].mxu0  ;;  %v2551_v13 = vld [vmem:[%s3493_s2 + $0x3] ss:$0 sm:$0xff] }
 0x101   : > { %v785_v16 = vadd.f32 %v2546_v12, %v784_v15  ;;  %v2552_v15 = vld [vmem:[%s3493_s2 + $0x4] ss:$0 sm:$0xff] }
 0x102   : > { %v797_v17 = vmul.f32 0.70710677, %v790_v14  ;;  %v794_v24 = vmul.f32 0.5, %v790_v14 }
 0x103   : > { %v796_v18 = vmul.f32 0.70710677, %v785_v16  ;;  %v793_v21 = vmul.f32 0.5, %v785_v16 }
 0x104   : > { %2893 = verf.f32 %v797_v17 }
 0x105   : > { %2895 = verf.f32 %v796_v18 }
 0x10e   : > { %v2894_v19 = vpop.eup %2893 }
 0x10f   : > { %v2896_v20 = vpop.eup %2895  ;;  %v801_v23 = vadd.f32 1.0, %v2894_v19 }
 0x110   : > { %v800_v22 = vadd.f32 1.0, %v2896_v20 }
 0x111   : > { %v803_v27 = vmul.f32 %v801_v23, %v794_v24 }
 0x112   : > { %v802_v25 = vmul.f32 %v800_v22, %v793_v21 }
 0x113   : > { %v810_v28 = vsel %vm806_vm1, %v803_v27, 0.0 }
 0x114   : > { %v807_v26 = vsel %vm806_vm1, %v802_v25, 0.0 }
 0x115   : > { %808 = vadd.xlane.f32.xlu0 %v807_v26 }
 0x119   : > { %811 = vadd.xlane.f32.xlu0 %v810_v28 }
 0x1a2   : > { %v809_v29 = vpop.xlane.xlu0 %808 }
 0x1a3   : > { %v814_v30 = vmul.f32 0.03125, %v809_v29 }
 0x1a5   : > { %v816_v31 = vsub.f32 %v802_v25, %v814_v30 }
 0x1a6   : > { %v812_v32 = vpop.xlane.xlu0 %811 }
 0x1a7   : > { %v815_v33 = vmul.f32 0.03125, %v812_v32  ;;  %v818_v34 = vmul.f32 %v816_v31, %v816_v31 }
 0x1a9   : > { %v817_v35 = vsub.f32 %v803_v27, %v815_v33  ;;  %v820_v36 = vsel %vm806_vm1, %v818_v34, 0.0 }
 0x1aa   : > { %821 = vadd.xlane.f32.xlu1 %v820_v36 }
 0x1ab   : > { %v819_v37 = vmul.f32 %v817_v35, %v817_v35 }
 0x1ad   : > { %v823_v38 = vsel %vm806_vm1, %v819_v37, 0.0 }
 0x1ae   : > { %824 = vadd.xlane.f32.xlu1 %v823_v38 }
 0x237   : > { %v822_v39 = vpop.xlane.xlu1 %821 }
 0x238   : > { %v826_v40 = vmul.f32 0.03125, %v822_v39 }
 0x23a   : > { %v828_v41 = vadd.f32 1e-12, %v826_v40 }
 0x23b   : > { %v825_v42 = vpop.xlane.xlu1 %824 }
 0x23c   : > { %2897 = vrsqrt.f32 %v828_v41  ;;  %v827_v43 = vmul.f32 0.03125, %v825_v42 }
 0x23e   : > { %v829_v44 = vadd.f32 1e-12, %v827_v43 }
 0x240   : > { %2899 = vrsqrt.f32 %v829_v44 }
 0x246   : > { %v2898_v45 = vpop.eup %2897 }
 0x247   : > { %v832_v47 = vmul.f32 %v2898_v45, %v816_v31 }
 0x249   : > { %v838_v49 = vmul.f32 %v2549_v46, %v832_v47 }
 0x24a   : > { %v2900_v50 = vpop.eup %2899 }
 0x24b   : > { %v844_v52 = vadd.f32 %v2550_v48, %v838_v49  ;;  %v833_v53 = vmul.f32 %v2900_v50, %v817_v35 }
 0x24d   : > { %v847_v54 = vadd.f32 %v846_v51, %v844_v52  ;;  %v839_v55 = vmul.f32 %v2549_v46, %v833_v53 }
 0x24f   : > { %v851_v56 = vsel %vm806_vm1, %v847_v54, 0.0  ;;  %v845_v57 = vadd.f32 %v2550_v48, %v839_v55 }
 0x250   : > { %852 = vadd.xlane.f32.xlu0 %v851_v56 }
 0x251   : > { %v848_v58 = vadd.f32 %v846_v51, %v845_v57 }
 0x253   : > { %v854_v59 = vsel %vm806_vm1, %v848_v58, 0.0 }
 0x254   : > { %855 = vadd.xlane.f32.xlu1 %v854_v59 }
 0x2dd   : > { %v853_v60 = vpop.xlane.xlu0 %852 }
 0x2de   : > { %v857_v61 = vmul.f32 0.03125, %v853_v60 }
 0x2e0   : > { %v859_v62 = vsub.f32 %v847_v54, %v857_v61 }
 0x2e1   : > { %v856_v63 = vpop.xlane.xlu1 %855 }
 0x2e2   : > { %v858_v0 = vmul.f32 0.03125, %v856_v63  ;;  %v861_v1 = vmul.f32 %v859_v62, %v859_v62 }
 0x2e4   : > { %v860_v2 = vsub.f32 %v848_v58, %v858_v0  ;;  %v863_v3 = vsel %vm806_vm1, %v861_v1, 0.0 }
 0x2e5   : > { %864 = vadd.xlane.f32.xlu0 %v863_v3 }
 0x2e6   : > { %v862_v4 = vmul.f32 %v860_v2, %v860_v2 }
 0x2e8   : > { %v866_v5 = vsel %vm806_vm1, %v862_v4, 0.0 }
 0x2e9   : > { %867 = vadd.xlane.f32.xlu1 %v866_v5 }
 0x372   : > { %v865_v6 = vpop.xlane.xlu0 %864 }
 0x373   : > { %v869_v7 = vmul.f32 0.03125, %v865_v6 }
 0x375   : > { %v871_v8 = vadd.f32 1e-12, %v869_v7 }
 0x376   : > { %v868_v9 = vpop.xlane.xlu1 %867 }
 0x377   : > { %2901 = vrsqrt.f32 %v871_v8  ;;  %v870_v10 = vmul.f32 0.03125, %v868_v9 }
 0x379   : > { %v872_v11 = vadd.f32 1e-12, %v870_v10 }
 0x37b   : > { %2903 = vrsqrt.f32 %v872_v11 }
 0x381   : > { %v2902_v12 = vpop.eup %2901 }
 0x382   : > { %v875_v14 = vmul.f32 %v2902_v12, %v859_v62 }
 0x384   : > { %v881_v16 = vmul.f32 %v2551_v13, %v875_v14 }
 0x385   : > { %v2904_v17 = vpop.eup %2903 }
 0x386   : > { %v887_v18 = vadd.f32 %v2552_v15, %v881_v16  ;;  %v876_v19 = vmul.f32 %v2904_v17, %v860_v2 }
 0x388   : > { %889 = vst.msk [vmem:[#allocation2] sm:$0xff] %vm806_vm1, %v887_v18  ;;  %v882_v20 = vmul.f32 %v2551_v13, %v876_v19 }
 0x38a   : > { %v888_v21 = vadd.f32 %v2552_v15, %v882_v20 }
 0x38c   : > { %890 = vst.msk [vmem:[#allocation2 + $0x8] sm:$0xff] %vm806_vm1, %v888_v21 }
 0x38d PF: > { %v920_v22 = vld [vmem:[%s3123_s3] sm:$0xff]  ;;  %v921_v23 = vld [vmem:[%s3123_s3 + $0x8] sm:$0xff]  ;;  %v922_v24 = vld [vmem:[%s3123_s3 + $0x10] sm:$0xff]  ;;  %vm931_vm2 = vcmask 261120   ;;  %v2984_v30 = vmov 0.0   ;;  %vm2985_vm3 = vmmov 0   ;;  %s3494_s26 = scalar_lea.vmem %s3460_s6, %s3113_s15  ;;  %v900_v40 = vlaneseq }
 0x38e   : > { %v2807_v25 = vpack.c.bf16 %v921_v23, %v920_v22  ;;  %v923_v26 = vld [vmem:[%s3123_s3 + $0x18] sm:$0xff]  ;;  %2695 = vmatprep.subr.mxu0 %v2984_v30  ;;  %2697 = vmatprep.mubr.msk.f32.mxu0 %vm2985_vm3, %v2984_v30  ;;  %v2553_v31 = vld [vmem:[%s3494_s26] ss:$0 sm:$0xff]  ;;  %s2986_s1 = smov 96   ;;  %vm1016_vm4 = vcmask 130048   ;;  %s3495_s20 = sld [smem:[#allocation9_spill]] }
 0x38f   : > { %v3210_v27 = vld [vmem:[#allocation2] sm:$0xff]  ;;  %v2811_v28 = vpack.c.bf16 %v923_v26, %v922_v24  ;;  %v2987_v38 = vmov 1966171168   ;;  %v3250_v44 = vshrl.u32 %v900_v40, 7  ;;  %vm1182_vm5 = vcmask 64512   ;;  %s2988_s22 = smov 64  }
 0x390   : > { %2682 = vmatprep.mubr.msk.f32.mxu1 %vm931_vm2, %v3210_v27  ;;  %2808 = vmatprep.subr.bf16.mxu1 %v2807_v25  ;;  %v898_v39 = vunpack.c.l.s4 %v2987_v38  ;;  %s2989_s17 = smov 80   ;;  %s2990_s5 = smov 112   ;;  %vm1946_vm6 = vcmask 523264  }
 0x391   : > { %2810 = vmatpush3.bf16.msra.mxu1 %v2807_v25  ;;  %v3254_v49 = vsub.s32 0, %v3250_v44  ;;  %s2991_s23 = smov 48   ;;  %s2992_s3 = smov 16  }
 0x392   : > { %2812 = vmatprep.subr.bf16.mxu1 %v2811_v28  ;;  %v899_v43 = vunpack.c.0.s8 %v898_v39  ;;  %p2575_p5 = scmp.ne.s32.totalorder %s3107_s21, 1 }
 0x393   : > { %v3214_v29 = vld [vmem:[#allocation2 + $0x8] sm:$0xff]  ;;  %vm2258_vm7 = vcmask (!%p2575_p5), 7168   ;;  %vm2995_vm8 = vmmov (!%p2575_p5), 0   ;;  %vm2338_vm9 = vcmask (!%p2575_p5), 1041409   ;;  %vm2412_vm10 = vcmask (!%p2575_p5), 254976  }
 0x394   : > { %v893_v41 = vld [vmem:[%s3495_s20] sm:$0x3]  ;;  %v902_v46 = vsub.s32 %v899_v43, %v3250_v44 }
 0x395   : > { %2814 = vmatpush3.bf16.msra.mxu1 %v2811_v28  ;;  %v894_v42 = vsub.f32 1.0, %v893_v41 }
 0x396   : > { %2685 = vmatprep.subr.mxu1 %v2984_v30 }
 0x397   : > { %v895_v45 = vmul.f32 -10000.0, %v894_v42 }
 0x398   : > { %2683 = vmatmul.mubr.msk.f32.vlgmr.msra.gmra.mrb[0].mxu1 %vm931_vm2, %v3214_v29 }
 0x399   : > { %2687 = vmatprep.mubr.msk.f32.mxu1 %vm2985_vm3, %v2984_v30  ;;  %v903_v47 = vrot.slane %v895_v45, %v902_v46 }
 0x39b   : > { %v911_v48 = vrot.slane %v903_v47, %v902_v46  ;;  %v904_v50 = vcombine.high %v903_v47, %v903_v47 }
 0x39d   : > { %v3257_v51 = vrot.slane %v911_v48, %v3254_v49  ;;  %v918_v52 = vrot.slane %v904_v50, %v902_v46 }
 0x39f   : > { %v3261_v57 = vrot.slane %v918_v52, %v3254_v49 }
 0x46b   : > { %v2684_v32 = vpop.f32.mrb[0].mxu1 }
 0x46c   : > { %v1004_v33 = vpop.f32.mrb[1].mxu1  ;;  %v3232_v35 = vadd.f32 %v2684_v32, %v2553_v31 }
 0x46d   : > { %v3229_v34 = vadd.f32 %v2553_v31, %v1004_v33 }
 0x46f   : > { %1014 = vrot.lane.b32.xlu0 %v3229_v34, %s2986_s1 }
 0x473   : > { %1092 = vrot.lane.b32.xlu0 %v3232_v35, %s2986_s1 }
 0x4e1   : > { %v1015_v36 = vpop.permute.xlu0 %1014 }
 0x4e2   : > { %2686 = vmatpush3.xpose.msk.msra.mxu1 %vm1016_vm4, %v1015_v36 }
 0x4e3   : > { %2690 = vmatprep.subr.mxu1 %v2984_v30 }
 0x4e5   : > { %2688 = vmatmul.mubr.msk.f32.vlgmr.msra.gmra.mrb[2].mxu1 %vm1016_vm4, %v3229_v34  ;;  %v1093_v37 = vpop.permute.xlu0 %1092 }
 0x4e6   : > { %2691 = vmatpush3.xpose.msk.msra.mxu1 %vm1016_vm4, %v1093_v37  ;;  %2692 = vmatprep.mubr.msk.f32.mxu1 %vm2985_vm3, %v2984_v30 }
 0x4e7   : > { %2700 = vmatprep.subr.mxu1 %v2984_v30 }
 0x4e9   : > { %2693 = vmatmul.mubr.msk.f32.vlgmr.msra.gmra.mrb[4].mxu1 %vm1016_vm4, %v3232_v35 }
 0x4ea   : > { %2702 = vmatprep.mubr.msk.f32.mxu1 %vm2985_vm3, %v2984_v30 }
 0x5b8   : > { %v1087_v53 = vpop.f32.mrb[2].mxu1 }
 0x5b9   : > { %v1168_v54 = vmul.f32 0.25, %v1087_v53  ;;  %v2689_v55 = vpop.f32.mrb[3].mxu1 }
 0x5bb   : > { %v1180_v56 = vadd.f32 %v3257_v51, %v1168_v54 }
 0x5bc   : > { %v1164_v58 = vpop.f32.mrb[4].mxu1 }
 0x5bd   : > { %v1169_v59 = vmul.f32 0.25, %v1164_v58  ;;  %v2694_v60 = vpop.f32.mrb[5].mxu1  ;;  %v1183_v61 = vsel %vm1182_vm5, %v1180_v56, -inf }
 0x5be   : > { %1184 = vmax.xlane.f32.xlu1 %v1183_v61  ;;  %v1702_v60 = vld [vmem:[%s3128_s28 + $0x8] sm:$0xff] }
 0x5bf   : > { %v1181_v62 = vadd.f32 %v3261_v57, %v1169_v59  ;;  %v1701_v59 = vld [vmem:[%s3128_s28] sm:$0xff] }
 0x5c0   : > { %v2815_v61 = vpack.c.bf16 %v1702_v60, %v1701_v59  ;;  %v1938_v60 = vld [vmem:[%s3144_s25 + $0x20] sm:$0xff] }
 0x5c1   : > { %v1186_v63 = vsel %vm1182_vm5, %v1181_v62, -inf }
 0x5c2   : > { %1187 = vmax.xlane.f32.xlu1 %v1186_v63 }
 0x5d3   : > { %1205 = vrot.lane.b32.xlu1 %v3229_v34, %s2988_s22 }
 0x5d7   : > { %1281 = vrot.lane.b32.xlu1 %v3232_v35, %s2988_s22 }
 0x5db   : > { %1359 = vrot.lane.b32.xlu1 %v3229_v34, %s2989_s17 }
 0x5df   : > { %1437 = vrot.lane.b32.xlu1 %v3232_v35, %s2989_s17 }
 0x64b   : > { %v1185_v0 = vpop.xlane.xlu1 %1184 }
 0x64c   : > { %v1189_v1 = vsub.f32 %v1180_v56, %v1185_v0 }
 0x64e   : > { %v1191_v2 = vmul.f32 1.442695, %v1189_v1 }
 0x64f   : > { %v1188_v3 = vpop.xlane.xlu1 %1187 }
 0x650   : > { %2905 = vpow2.f32 %v1191_v2  ;;  %v1190_v4 = vsub.f32 %v1181_v62, %v1188_v3  ;;  %v1704_v62 = vld [vmem:[%s3128_s28 + $0x18] sm:$0xff] }
 0x652   : > { %v1193_v5 = vmul.f32 1.442695, %v1190_v4 }
 0x653   : > { %v1206_v6 = vpop.permute.xlu1 %1205 }
 0x654   : > { %2907 = vpow2.f32 %v1193_v5  ;;  %2696 = vmatpush3.msra.mxu0 %v1206_v6 }
 0x655   : > { %2705 = vmatprep.subr.mxu0 %v2984_v30 }
 0x657   : > { %v1282_v7 = vpop.permute.xlu1 %1281 }
 0x658   : > { %2701 = vmatpush3.msra.mxu1 %v1282_v7 }
 0x659   : > { %2710 = vmatprep.subr.mxu1 %v2984_v30 }
 0x65a   : > { %v2906_v8 = vpop.eup %2905 }
 0x65b   : > { %v1195_v9 = vsel %vm1182_vm5, %v2906_v8, 0.0  ;;  %v1360_v12 = vpop.permute.xlu1 %1359 }
 0x65c   : > { %1196 = vadd.xlane.f32.xlu0 %v1195_v9 }
 0x65e   : > { %v2908_v10 = vpop.eup %2907 }
 0x65f   : > { %v1198_v11 = vsel %vm1182_vm5, %v2908_v10, 0.0  ;;  %v1438_v13 = vpop.permute.xlu1 %1437 }
 0x660   : > { %1199 = vadd.xlane.f32.xlu1 %v1198_v11 }
 0x671   : > { %1435 = vrot.lane.b32.xlu1 %v3232_v35, %s2990_s5 }
 0x672   : > { %1357 = vrot.lane.b32.xlu0 %v3229_v34, %s2990_s5 }
 0x6e9   : > { %v1197_v14 = vpop.xlane.xlu0 %1196 }
 0x6ea   : > { %2909 = vrcp.f32 %v1197_v14 }
 0x6ed   : > { %v1200_v15 = vpop.xlane.xlu1 %1199  ;;  %v1358_v20 = vpop.permute.xlu0 %1357 }
 0x6ee   : > { %2911 = vrcp.f32 %v1200_v15 }
 0x6f1   : > { %v1436_v21 = vpop.permute.xlu1 %1435 }
 0x6f4   : > { %v2910_v16 = vpop.eup %2909 }
 0x6f5   : > { %v1203_v17 = vmul.f32 %v2910_v16, %v2906_v8  ;;  %v3317_v8 = vld [vmem:[%s3149_s27] sm:$0x3f]  ;;  %s3496_s27 = scalar_lea.vmem %s3463_s9, %s3113_s15 }
 0x6f6   : > { %v1708_v9 = vrot.slane %v3317_v8, %v3254_v49 }
 0x6f7   : > { %2698 = vmatmul.mubr.msk.f32.vlgmr.msra.gmra.mrb[0].mxu0 %vm1182_vm5, %v1203_v17 }
 0x6f8   : > { %v2912_v18 = vpop.eup %2911  ;;  %2706 = vmatpush3.xpose.msk.msra.mxu0 %vm1016_vm4, %v1360_v12  ;;  %2707 = vmatprep.mubr.msk.f32.mxu0 %vm2985_vm3, %v2984_v30 }
 0x6f9   : > { %v1204_v19 = vmul.f32 %v2912_v18, %v2908_v10  ;;  %2715 = vmatprep.subr.mxu0 %v2984_v30 }
 0x6fb   : > { %2703 = vmatmul.mubr.msk.f32.vlgmr.msra.gmra.mrb[6].mxu1 %vm1182_vm5, %v1204_v19  ;;  %2708 = vmatmul.mubr.msk.f32.vlgmr.msra.gmra.mrb[2].mxu0 %vm1016_vm4, %v1358_v20 }
 0x6fc   : > { %2711 = vmatpush3.xpose.msk.msra.mxu1 %vm1016_vm4, %v1438_v13  ;;  %2712 = vmatprep.mubr.msk.f32.mxu1 %vm2985_vm3, %v2984_v30 }
 0x6fd   : > { %2720 = vmatprep.subr.mxu1 %v2984_v30  ;;  %2717 = vmatprep.mubr.msk.f32.mxu0 %vm2985_vm3, %v2984_v30 }
 0x6ff   : > { %2713 = vmatmul.mubr.msk.f32.vlgmr.msra.gmra.mrb[8].mxu1 %vm1016_vm4, %v1436_v21 }
 0x700   : > { %2722 = vmatprep.mubr.msk.f32.mxu1 %vm2985_vm3, %v2984_v30 }
 0x7ca   : > { %v3292_v22 = vpop.f32.mrb[0].mxu0 }
 0x7cb   : > { %v2699_v23 = vpop.f32.mrb[1].mxu0 }
 0x7ce   : > { %v3294_v24 = vpop.f32.mrb[6].mxu1  ;;  %v1431_v25 = vpop.f32.mrb[2].mxu0 }
 0x7cf   : > { %v1513_v26 = vmul.f32 0.25, %v1431_v25  ;;  %v2704_v28 = vpop.f32.mrb[7].mxu1  ;;  %v2709_v31 = vpop.f32.mrb[3].mxu0  ;;  %v1831_v25 = vld [vmem:[%s3133_s30] sm:$0xff] }
 0x7d0   : > { %v1833_v31 = vld [vmem:[%s3133_s30 + $0x10] sm:$0xff] }
 0x7d1   : > { %v1515_v32 = vadd.f32 %v1513_v26, %v3257_v51  ;;  %v1832_v26 = vld [vmem:[%s3133_s30 + $0x8] sm:$0xff] }
 0x7d2   : > { %v1509_v33 = vpop.f32.mrb[8].mxu1  ;;  %v2823_v28 = vpack.c.bf16 %v1832_v26, %v1831_v25 }
 0x7d3   : > { %v1514_v36 = vmul.f32 0.25, %v1509_v33  ;;  %v2714_v37 = vpop.f32.mrb[9].mxu1  ;;  %v1517_v38 = vsel %vm1182_vm5, %v1515_v32, -inf }
 0x7d4   : > { %1518 = vmax.xlane.f32.xlu1 %v1517_v38 }
 0x7d5   : > { %v1516_v39 = vadd.f32 %v1514_v36, %v3261_v57 }
 0x7d7   : > { %v1520_v30 = vsel %vm1182_vm5, %v1516_v39, -inf }
 0x7d8   : > { %1521 = vmax.xlane.f32.xlu0 %v1520_v30 }
 0x7ee   : > { %1615 = vrot.lane.b32.xlu0 %v3232_v35, %s2991_s23 }
 0x861   : > { %v1519_v40 = vpop.xlane.xlu1 %1518 }
 0x862   : > { %v1523_v41 = vsub.f32 %v1515_v32, %v1519_v40  ;;  %v1834_v32 = vld [vmem:[%s3133_s30 + $0x18] sm:$0xff] }
 0x863   : > { %v2827_v33 = vpack.c.bf16 %v1834_v32, %v1833_v31 }
 0x864   : > { %v1525_v42 = vmul.f32 1.442695, %v1523_v41  ;;  %v1821_v41 = vsub.s32 1, %v3250_v44 }
 0x865   : > { %v1522_v43 = vpop.xlane.xlu0 %1521 }
 0x866   : > { %2913 = vpow2.f32 %v1525_v42  ;;  %v1524_v45 = vsub.f32 %v1516_v39, %v1522_v43  ;;  %v1827_v42 = vsub.s32 2, %v3250_v44  ;;  %v1822_v43 = vrot.slane %v3317_v8, %v1821_v41 }
 0x868   : > { %v1527_v46 = vmul.f32 1.442695, %v1524_v45 }
 0x869   : > { %v1616_v47 = vpop.permute.xlu0 %1615 }
 0x86a   : > { %2915 = vpow2.f32 %v1527_v46  ;;  %2721 = vmatpush3.msra.mxu1 %v1616_v47  ;;  %v1828_v47 = vrot.slane %v3317_v8, %v1827_v42 }
 0x86b   : > { %2824 = vmatprep.subr.bf16.mxu1 %v2823_v28 }
 0x870   : > { %v2914_v48 = vpop.eup %2913 }
 0x871   : > { %v1529_v50 = vsel %vm1182_vm5, %v2914_v48, 0.0 }
 0x872   : > { %1530 = vadd.xlane.f32.xlu1 %v1529_v50 }
 0x874   : > { %v2916_v51 = vpop.eup %2915 }
 0x875   : > { %v1532_v52 = vsel %vm1182_vm5, %v2916_v51, 0.0 }
 0x876   : > { %1533 = vadd.xlane.f32.xlu1 %v1532_v52 }
 0x887   : > { %1539 = vrot.lane.b32.xlu1 %v3229_v34, %s2991_s23  ;;  %v1703_v34 = vld [vmem:[%s3128_s28 + $0x10] sm:$0xff] }
 0x888   : > { %v2819_v63 = vpack.c.bf16 %v1704_v62, %v1703_v34  ;;  %v1940_v62 = vld [vmem:[%s3144_s25 + $0x30] sm:$0xff] }
 0x8ff   : > { %v1531_v35 = vpop.xlane.xlu1 %1530 }
 0x900   : > { %2917 = vrcp.f32 %v1531_v35 }
 0x903   : > { %v1534_v53 = vpop.xlane.xlu1 %1533 }
 0x904   : > { %2919 = vrcp.f32 %v1534_v53 }
 0x907   : > { %v1540_v54 = vpop.permute.xlu1 %1539 }
 0x908   : > { %2716 = vmatpush3.msra.mxu0 %v1540_v54  ;;  %v1934_v54 = vld [vmem:[%s3144_s25] sm:$0xff] }
 0x909   : > { %2816 = vmatprep.subr.bf16.mxu0 %v2815_v61 }
 0x90a   : > { %v2918_v55 = vpop.eup %2917 }
 0x90b   : > { %v1537_v56 = vmul.f32 %v2918_v55, %v2914_v48  ;;  %v1935_v55 = vld [vmem:[%s3144_s25 + $0x8] sm:$0xff] }
 0x90d   : > { %2718 = vmatmul.mubr.msk.f32.vlgmr.msra.gmra.mrb[4].mxu0 %vm1182_vm5, %v1537_v56  ;;  %v2831_v56 = vpack.c.bf16 %v1935_v55, %v1934_v54 }
 0x90e   : > { %v2920_v57 = vpop.eup %2919  ;;  %2818 = vmatpush3.bf16.msra.mxu0 %v2815_v61  ;;  %v1939_v61 = vld [vmem:[%s3144_s25 + $0x28] sm:$0xff] }
 0x90f   : > { %v1538_v58 = vmul.f32 %v2920_v57, %v2916_v51  ;;  %2820 = vmatprep.subr.bf16.mxu0 %v2819_v63  ;;  %v1936_v57 = vld [vmem:[%s3144_s25 + $0x10] sm:$0xff]  ;;  %v2839_v34 = vpack.c.bf16 %v1939_v61, %v1938_v60  ;;  %v2168_v61 = vld [vmem:[%s3468_s14] sm:$0xff] (!%p2575_p5) }
 0x911   : > { %2723 = vmatmul.mubr.msk.f32.vlgmr.msra.gmra.mrb[10].mxu1 %vm1182_vm5, %v1538_v58  ;;  %v1937_v58 = vld [vmem:[%s3144_s25 + $0x18] sm:$0xff] }
 0x912   : > { %2822 = vmatpush3.bf16.msra.mxu0 %v2819_v63  ;;  %2826 = vmatpush3.bf16.msra.mxu1 %v2823_v28  ;;  %v2835_v59 = vpack.c.bf16 %v1937_v58, %v1936_v57  ;;  %v1941_v63 = vld [vmem:[%s3144_s25 + $0x38] sm:$0xff]  ;;  %v2076_v57 = vld [vmem:[%s3466_s12 + $0x10] sm:$0xff] (!%p2575_p5) }
 0x913   : > { %2828 = vmatprep.subr.bf16.mxu1 %v2827_v33  ;;  %2832 = vmatprep.subr.bf16.mxu0 %v2831_v56 }
 0x916   : > { %2830 = vmatpush3.bf16.msra.mxu1 %v2827_v33 }
 0x9e0   : > { %v1611_v0 = vpop.f32.mrb[4].mxu0 }
 0x9e1   : > { %1693 = vrot.lane.b32.xlu1 %v1611_v0, %s2992_s3  ;;  %v2719_v1 = vpop.f32.mrb[5].mxu0  ;;  %v2843_v0 = vpack.c.bf16 %v1941_v63, %v1940_v62  ;;  %v2576_v63 = vld [vmem:[%s3467_s13] ss:$0 sm:$0xff] (!%p2575_p5) }
 0x9e2   : > { %v2570_v1 = vld [vmem:[%s3496_s27] ss:$0 sm:$0xff] }
 0x9e4   : > { %v1687_v2 = vpop.f32.mrb[10].mxu1 }
 0x9e5   : > { %1695 = vrot.lane.b32.xlu1 %v1687_v2, %s2992_s3  ;;  %v2724_v3 = vpop.f32.mrb[11].mxu1  ;;  %s3497_s3 = sld [smem:[#allocation14_spill]] (!%p2575_p5) }
 0xa53   : > { %v1694_v4 = vpop.permute.xlu1 %1693 }
 0xa54   : > { %v1699_v5 = vsel %vm1016_vm4, %v3292_v22, %v1694_v4 }
 0xa55   : > { %2733 = vmatprep.mubr.msk.f32.mxu0 %vm931_vm2, %v1699_v5 }
 0xa57   : > { %v1696_v6 = vpop.permute.xlu1 %1695 }
 0xa58   : > { %v1700_v7 = vsel %vm1016_vm4, %v3294_v24, %v1696_v6 }
 0xa59   : > { %2734 = vmatmul.mubr.msk.f32.vlgmr.msra.gmra.mrb[6].mxu0 %vm931_vm2, %v1700_v7 }
 0xa5a   : > { %2834 = vmatpush3.bf16.msra.mxu0 %v2831_v56 }
 0xa5b   : > { %2836 = vmatprep.subr.bf16.mxu0 %v2835_v59 }
 0xa5e   : > { %2838 = vmatpush3.bf16.msra.mxu0 %v2835_v59  ;;  %v2077_v59 = vld [vmem:[%s3466_s12 + $0x18] sm:$0xff] (!%p2575_p5) }
 0xa5f   : > { %2840 = vmatprep.subr.bf16.mxu0 %v2839_v34  ;;  %v2851_v60 = vpack.c.bf16 (!%p2575_p5), %v2077_v59, %v2076_v57  ;;  %v2327_v57 = vld [vmem:[%s3470_s16 + $0x10] sm:$0xff] (!%p2575_p5) }
 0xa62   : > { %2842 = vmatpush3.bf16.msra.mxu0 %v2839_v34  ;;  %v2169_v34 = vld [vmem:[%s3468_s14 + $0x8] sm:$0xff] (!%p2575_p5) }
 0xa63   : > { %2844 = vmatprep.subr.bf16.mxu0 %v2843_v0  ;;  %v2855_v62 = vpack.c.bf16 (!%p2575_p5), %v2169_v34, %v2168_v61 }
 0xa65   : > { %2856 = vmatprep.subr.bf16.mxu1 (!%p2575_p5), %v2855_v62 }
 0xa66   : > { %2846 = vmatpush3.bf16.msra.mxu0 %v2843_v0 }
 0xb2c   : > { %v2735_v10 = vpop.f32.mrb[6].mxu0 }
 0xb2d   : > { %v1787_v11 = vadd.f32 %v2735_v10, %v1708_v9  ;;  %v1781_v12 = vpop.f32.mrb[7].mxu0 }
 0xb2e   : > { %v1782_v13 = vadd.f32 %v1781_v12, %v1708_v9 }
 0xb2f   : > { %v1791_v14 = vadd.f32 %v1787_v11, %v3214_v29 }
 0xb30   : > { %v1790_v15 = vadd.f32 %v1782_v13, %v3210_v27 }
 0xb31   : > { %v1795_v16 = vsel %vm931_vm2, %v1791_v14, 0.0 }
 0xb32   : > { %1796 = vadd.xlane.f32.xlu1 %v1795_v16  ;;  %v1792_v17 = vsel %vm931_vm2, %v1790_v15, 0.0 }
 0xb33   : > { %1793 = vadd.xlane.f32.xlu0 %v1792_v17  ;;  %v1944_v17 = vsub.s32 3, %v3250_v44 }
 0xbbf   : > { %v1797_v18 = vpop.xlane.xlu1 %1796 }
 0xbc0   : > { %v1800_v19 = vmul.f32 0.03125, %v1797_v18  ;;  %v1794_v49 = vpop.xlane.xlu0 %1793  ;;  %v1945_v18 = vrot.slane %v3317_v8, %v1944_v17 }
 0xbc1   : > { %v1799_v20 = vmul.f32 0.03125, %v1794_v49 }
 0xbc2   : > { %v1802_v21 = vsub.f32 %v1791_v14, %v1800_v19 }
 0xbc3   : > { %v1801_v22 = vsub.f32 %v1790_v15, %v1799_v20 }
 0xbc4   : > { %v1804_v27 = vmul.f32 %v1802_v21, %v1802_v21 }
 0xbc5   : > { %v1803_v23 = vmul.f32 %v1801_v22, %v1801_v22 }
 0xbc6   : > { %v1808_v24 = vsel %vm931_vm2, %v1804_v27, 0.0 }
 0xbc7   : > { %v1805_v29 = vsel %vm931_vm2, %v1803_v23, 0.0 }
 0xbc8   : > { %1806 = vadd.xlane.f32.xlu0 %v1805_v29 }
 0xbcc   : > { %1809 = vadd.xlane.f32.xlu0 %v1808_v24 }
 0xc55   : > { %v1807_v36 = vpop.xlane.xlu0 %1806 }
 0xc56   : > { %v1811_v37 = vmul.f32 0.03125, %v1807_v36 }
 0xc58   : > { %v1813_v38 = vadd.f32 1e-12, %v1811_v37 }
 0xc59   : > { %v1810_v39 = vpop.xlane.xlu0 %1809 }
 0xc5a   : > { %2921 = vrsqrt.f32 %v1813_v38  ;;  %v1812_v30 = vmul.f32 0.03125, %v1810_v39 }
 0xc5c   : > { %v1814_v40 = vadd.f32 1e-12, %v1812_v30 }
 0xc5e   : > { %2923 = vrsqrt.f32 %v1814_v40 }
 0xc64   : > { %v2922_v45 = vpop.eup %2921 }
 0xc65   : > { %v1817_v46 = vmul.f32 %v2922_v45, %v1801_v22  ;;  %v2058_v45 = vsub.s32 4, %v3250_v44 }
 0xc67   : > { %v1823_v48 = vmul.f32 %v1822_v43, %v1817_v46  ;;  %v2064_v46 = vsub.s32 5, %v3250_v44  ;;  %v2074_v44 = vld [vmem:[%s3466_s12] sm:$0xff] (!%p2575_p5) }
 0xc68   : > { %v2924_v50 = vpop.eup %2923 }
 0xc69   : > { %v1818_v51 = vmul.f32 %v2924_v50, %v1802_v21  ;;  %v1829_v52 = vadd.f32 %v1828_v47, %v1823_v48 }
 0xc6b   : > { %v1824_v35 = vmul.f32 %v1822_v43, %v1818_v51  ;;  %2744 = vmatprep.mubr.msk.f32.mxu1 %vm931_vm2, %v1829_v52  ;;  %v2065_v51 = vrot.slane %v3317_v8, %v2064_v46 }
 0xc6d   : > { %v1830_v53 = vadd.f32 %v1828_v47, %v1824_v35  ;;  %v2059_v47 = vrot.slane %v3317_v8, %v2058_v45  ;;  %v2075_v8 = vld [vmem:[%s3466_s12 + $0x8] sm:$0xff] (!%p2575_p5) }
 0xc6e   : > { %v2847_v58 = vpack.c.bf16 (!%p2575_p5), %v2075_v8, %v2074_v44  ;;  %v2994_v8 = vmov (!%p2575_p5), 0.0|0.0  }
 0xc6f   : > { %2745 = vmatmul.mubr.msk.f32.vlgmr.msra.gmra.mrb[12].mxu1 %vm931_vm2, %v1830_v53 }
 0xc70   : > { %2848 = vmatprep.subr.bf16.mxu0 (!%p2575_p5), %v2847_v58  ;;  %2858 = vmatpush3.bf16.msra.mxu1 (!%p2575_p5), %v2855_v62 }
 0xc71   : > { %2859 = vmatprep.subr.bf16.mxu1 (!%p2575_p5), %v2994_v8 }
 0xd42   : > { %v2746_v2 = vpop.f32.mrb[12].mxu1 }
 0xd43   : > { %v1920_v3 = vadd.f32 %v2746_v2, %v2570_v1  ;;  %v1914_v4 = vpop.f32.mrb[13].mxu1 }
 0xd44   : > { %v1915_v5 = vadd.f32 %v2570_v1, %v1914_v4 }
 0xd45   : > { %v1927_v6 = vmul.f32 0.70710677, %v1920_v3  ;;  %v1924_v14 = vmul.f32 0.5, %v1920_v3 }
 0xd46   : > { %v1926_v7 = vmul.f32 0.70710677, %v1915_v5  ;;  %v1923_v12 = vmul.f32 0.5, %v1915_v5 }
 0xd47   : > { %2925 = verf.f32 %v1927_v6  ;;  %v2993_v6 = vmov (!%p2575_p5), 0  }
 0xd48   : > { %2927 = verf.f32 %v1926_v7  ;;  %2933 = vset.pattern.permute.xlu0 (!%p2575_p5), %v2993_v6  ;;  %v2579_v7 = vld [vmem:[#allocation3] ss:$0 sm:$0xff] (!%p2575_p5) }
 0xd51   : > { %v2926_v9 = vpop.eup %2925 }
 0xd52   : > { %v2928_v10 = vpop.eup %2927  ;;  %v1931_v11 = vadd.f32 1.0, %v2926_v9 }
 0xd53   : > { %v1930_v13 = vadd.f32 1.0, %v2928_v10 }
 0xd54   : > { %v1933_v16 = vmul.f32 %v1931_v11, %v1924_v14 }
 0xd55   : > { %v1932_v15 = vmul.f32 %v1930_v13, %v1923_v12 }
 0xd57   : > { %2763 = vmatprep.mubr.msk.f32.mxu0 %vm1946_vm6, %v1932_v15 }
 0xd58   : > { %2764 = vmatmul.mubr.msk.f32.vlgmr.msra.gmra.mrb[8].mxu0 %vm1946_vm6, %v1933_v16 }
 0xd59   : > { %2850 = vmatpush3.bf16.msra.mxu0 (!%p2575_p5), %v2847_v58  ;;  %v2328_v58 = vld [vmem:[%s3470_s16 + $0x18] sm:$0xff] (!%p2575_p5) }
 0xd5a   : > { %2852 = vmatprep.subr.bf16.mxu0 (!%p2575_p5), %v2851_v60  ;;  %v2863_v59 = vpack.c.bf16 (!%p2575_p5), %v2328_v58, %v2327_v57 }
 0xd5d   : > { %2854 = vmatpush3.bf16.msra.mxu0 (!%p2575_p5), %v2851_v60  ;;  %v2996_v60 = vmov (!%p2575_p5), 0.0  }
 0xe2b   : > { %v2765_v19 = vpop.f32.mrb[8].mxu0 }
 0xe2c   : > { %v2025_v49 = vadd.f32 %v2765_v19, %v1945_v18  ;;  %v2019_v20 = vpop.f32.mrb[9].mxu0 }
 0xe2d   : > { %v2020_v21 = vadd.f32 %v2019_v20, %v1945_v18 }
 0xe2e   : > { %v2029_v22 = vadd.f32 %v2025_v49, %v1830_v53 }
 0xe2f   : > { %v2028_v23 = vadd.f32 %v2020_v21, %v1829_v52 }
 0xe30   : > { %v2033_v29 = vsel %vm931_vm2, %v2029_v22, 0.0 }
 0xe31   : > { %2034 = vadd.xlane.f32.xlu0 %v2033_v29  ;;  %v2030_v27 = vsel %vm931_vm2, %v2028_v23, 0.0 }
 0xe32   : > { %2031 = vadd.xlane.f32.xlu1 %v2030_v27 }
 0xebe   : > { %v2035_v24 = vpop.xlane.xlu0 %2034 }
 0xebf   : > { %v2037_v25 = vmul.f32 0.03125, %v2035_v24  ;;  %v2032_v26 = vpop.xlane.xlu1 %2031 }
 0xec0   : > { %v2036_v28 = vmul.f32 0.03125, %v2032_v26 }
 0xec1   : > { %v2039_v31 = vsub.f32 %v2029_v22, %v2037_v25 }
 0xec2   : > { %v2038_v32 = vsub.f32 %v2028_v23, %v2036_v28 }
 0xec3   : > { %v2041_v33 = vmul.f32 %v2039_v31, %v2039_v31 }
 0xec4   : > { %v2040_v36 = vmul.f32 %v2038_v32, %v2038_v32 }
 0xec5   : > { %v2045_v37 = vsel %vm931_vm2, %v2041_v33, 0.0 }
 0xec6   : > { %2046 = vadd.xlane.f32.xlu0 %v2045_v37  ;;  %v2042_v38 = vsel %vm931_vm2, %v2040_v36, 0.0 }
 0xec7   : > { %2043 = vadd.xlane.f32.xlu1 %v2042_v38 }
 0xf53   : > { %v2047_v39 = vpop.xlane.xlu0 %2046 }
 0xf54   : > { %v2049_v30 = vmul.f32 0.03125, %v2047_v39  ;;  %v2044_v40 = vpop.xlane.xlu1 %2043 }
 0xf55   : > { %v2048_v41 = vmul.f32 0.03125, %v2044_v40 }
 0xf56   : > { %v2051_v42 = vadd.f32 1e-12, %v2049_v30 }
 0xf57   : > { %v2050_v43 = vadd.f32 1e-12, %v2048_v41 }
 0xf58   : > { %2929 = vrsqrt.f32 %v2051_v42 }
 0xf59   : > { %2931 = vrsqrt.f32 %v2050_v43 }
 0xf62   : > { %v2930_v48 = vpop.eup %2929 }
 0xf63   : > { %v2932_v50 = vpop.eup %2931  ;;  %v2055_v52 = vmul.f32 %v2930_v48, %v2039_v31 }
 0xf64   : > { %v2054_v35 = vmul.f32 %v2932_v50, %v2038_v32  ;;  %2073 = sbr.rel (%p2575_p5) target bundleno = 4806 (0x12c6), region = 100 }
 0xf65   : > { %v2061_v53 = vmul.f32 %v2059_v47, %v2055_v52 }
 0xf66   : > { %v2060_v54 = vmul.f32 %v2059_v47, %v2054_v35 }
 0xf67   : > { %v3360_v55 = vadd.f32 %v2065_v51, %v2061_v53  ;;  %v2325_v53 = vld [vmem:[%s3470_s16] sm:$0xff] (!%p2575_p5) }
 0xf68   : > { %v3362_v56 = vadd.f32 %v2065_v51, %v2060_v54  ;;  %v2326_v54 = vld [vmem:[%s3470_s16 + $0x8] sm:$0xff] (!%p2575_p5) }
 0xf69   : > { %2069 = vst.msk [vmem:[#allocation2 + $0x8] sm:$0xff] %vm931_vm2, %v3360_v55  ;;  %v2860_v44 = vpack.c.bf16 (!%p2575_p5), %v2326_v54, %v2325_v53 }
 0xf6a   : > { %2068 = vst.msk [vmem:[#allocation2] sm:$0xff] %vm931_vm2, %v3362_v56  ;;  %2774 = vmatprep.mubr.msk.f32.mxu0 (!%p2575_p5), %vm931_vm2, %v3362_v56 }
 0xf6b   : > { %2775 = vmatmul.mubr.msk.f32.vlgmr.msra.gmra.mrb[0].mxu0 %vm931_vm2, %v3360_v55 }
0x103e   : > { %v2776_v0 = vpop.f32.mrb[0].mxu0 }
0x103f   : > { %v2163_v1 = vadd.f32 %v2776_v0, %v2576_v63  ;;  %v2157_v2 = vpop.f32.mrb[1].mxu0 }
0x1040   : > { %v2158_v3 = vadd.f32 %v2576_v63, %v2157_v2 }
0x1042   : > { %2934 = vtanh.f32 %v2158_v3 }
0x1043   : > { %2936 = vtanh.f32 %v2163_v1 }
0x104c   : > { %v2935_v4 = vpop.eup %2934 }
0x104d   : > { %v2937_v5 = vpop.eup %2936  ;;  %2781 = vmatprep.mubr.msk.f32.mxu1 %vm1016_vm4, %v2935_v4 }
0x104e   : > { %2782 = vmatmul.mubr.msk.f32.vlgmr.msra.gmra.mrb[0].mxu1 %vm1016_vm4, %v2937_v5 }
0x104f   : > { %2861 = vmatpush3.bf16.msra.mxu1 %v2860_v44  ;;  %2792 = vmatprep.mubr.msk.f32.mxu1 %vm2995_vm8, %v2996_v60 }
0x1050   : > { %2862 = vmatprep.subr.bf16.mxu1 %v2994_v8 }
0x1053   : > { %2864 = vmatpush3.bf16.msra.mxu1 %v2863_v59 }
0x1121   : > { %v2783_v9 = vpop.f32.mrb[0].mxu1 }
0x1122   : > { %v2255_v10 = vadd.f32 %v2783_v9, %v2579_v7  ;;  %v2249_v11 = vpop.f32.mrb[1].mxu1 }
0x1123   : > { %v2250_v12 = vadd.f32 %v2579_v7, %v2249_v11 }
0x1124   : > { %v2266_v13 = vsel %vm2258_vm7, %v2255_v10, -inf }
0x1125   : > { %v2267_v14 = vrot.slane %v2266_v13, 4  ;;  %v2259_v15 = vsel %vm2258_vm7, %v2250_v12, -inf }
0x1126   : > { %v2260_v16 = vrot.slane %v2259_v15, 4 }
0x1127   : > { %v2268_v17 = vmax.f32 %v2266_v13, %v2267_v14 }
0x1128   : > { %v2261_v18 = vmax.f32 %v2259_v15, %v2260_v16 }
0x1129   : > { %v2269_v19 = vrot.slane %v2268_v17, 2 }
0x112a   : > { %v2262_v49 = vrot.slane %v2261_v18, 2 }
0x112b   : > { %v2270_v20 = vmax.f32 %v2268_v17, %v2269_v19 }
0x112c   : > { %v2263_v21 = vmax.f32 %v2261_v18, %v2262_v49 }
0x112d   : > { %v2271_v22 = vrot.slane %v2270_v20, 1 }
0x112e   : > { %v2264_v23 = vrot.slane %v2263_v21, 1 }
0x112f   : > { %v2272_v29 = vmax.f32 %v2270_v20, %v2271_v22 }
0x1130   : > { %v2265_v27 = vmax.f32 %v2263_v21, %v2264_v23 }
0x1131   : > { %v2274_v24 = vsub.f32 %v2255_v10, %v2272_v29 }
0x1132   : > { %v2273_v25 = vsub.f32 %v2250_v12, %v2265_v27 }
0x1133   : > { %v2277_v26 = vmul.f32 1.442695, %v2274_v24 }
0x1134   : > { %v2275_v28 = vmul.f32 1.442695, %v2273_v25 }
0x1135   : > { %2938 = vpow2.f32 %v2277_v26 }
0x1136   : > { %2940 = vpow2.f32 %v2275_v28 }
0x113f   : > { %v2939_v31 = vpop.eup %2938 }
0x1140   : > { %v2941_v32 = vpop.eup %2940  ;;  %v2286_v33 = vsel %vm2258_vm7, %v2939_v31, 0.0 }
0x1141   : > { %v2287_v36 = vrot.slane %v2286_v33, 4  ;;  %v2279_v37 = vsel %vm2258_vm7, %v2941_v32, 0.0 }
0x1142   : > { %v2280_v38 = vrot.slane %v2279_v37, 4 }
0x1143   : > { %v2288_v39 = vadd.f32 %v2287_v36, %v2286_v33 }
0x1144   : > { %v2281_v30 = vadd.f32 %v2280_v38, %v2279_v37 }
0x1145   : > { %v2289_v40 = vrot.slane %v2288_v39, 2 }
0x1146   : > { %v2282_v41 = vrot.slane %v2281_v30, 2 }
0x1147   : > { %v2290_v42 = vadd.f32 %v2289_v40, %v2288_v39 }
0x1148   : > { %v2283_v43 = vadd.f32 %v2282_v41, %v2281_v30 }
0x1149   : > { %v2291_v45 = vrot.slane %v2290_v42, 1 }
0x114a   : > { %v2284_v46 = vrot.slane %v2283_v43, 1 }
0x114b   : > { %v2292_v47 = vadd.f32 %v2291_v45, %v2290_v42 }
0x114c   : > { %v2285_v48 = vadd.f32 %v2284_v46, %v2283_v43 }
0x114d   : > { %2942 = vrcp.f32 %v2292_v47 }
0x114e   : > { %2944 = vrcp.f32 %v2285_v48 }
0x1157   : > { %v2943_v50 = vpop.eup %2942 }
0x1158   : > { %v2945_v51 = vpop.eup %2944  ;;  %v2296_v52 = vmul.f32 %v2943_v50, %v2939_v31 }
0x1159   : > { %v2294_v35 = vmul.f32 %v2945_v51, %v2941_v32 }
0x115a   : > { %2298 = vst.msk [vmem:[%s3473_s19 + $0x8] sm:$0xff] %vm2258_vm7, %v2296_v52 }
0x115b   : > { %2301 = vperm.xlu0 %2933, %v2294_v35   ;;  %2297 = vst.msk [vmem:[%s3473_s19] sm:$0xff] %vm2258_vm7, %v2294_v35 }
0x115f   : > { %2306 = vperm.xlu0 %2933, %v2296_v52  }
0x11da   : > { %v2302_v61 = vpop.permute.xlu0 %2301 }
0x11db   : > { %v2309_v34 = vmul.f32 %v2302_v61, %v3362_v56 }
0x11dd   : > { %v2311_v62 = vsel %vm931_vm2, %v2309_v34, 0.0 }
0x11de   : > { %v2312_v63 = vrot.slane %v2311_v62, 4  ;;  %v2307_v0 = vpop.permute.xlu0 %2306 }
0x11df   : > { %v2310_v1 = vmul.f32 %v2307_v0, %v3360_v55  ;;  %v2582_v55 = vld [vmem:[%s3497_s3] ss:$0 sm:$0xff] }
0x11e0   : > { %v2313_v2 = vadd.f32 %v2312_v63, %v2311_v62 }
0x11e1   : > { %v2318_v3 = vsel %vm931_vm2, %v2310_v1, 0.0 }
0x11e2   : > { %v2314_v4 = vrot.slane %v2313_v2, 2  ;;  %v2319_v5 = vrot.slane %v2318_v3, 4 }
0x11e4   : > { %v2315_v6 = vadd.f32 %v2314_v4, %v2313_v2  ;;  %v2320_v7 = vadd.f32 %v2319_v5, %v2318_v3 }
0x11e6   : > { %v2321_v9 = vrot.slane %v2320_v7, 2  ;;  %v2316_v10 = vrot.slane %v2315_v6, 1 }
0x11e8   : > { %v2322_v11 = vadd.f32 %v2321_v9, %v2320_v7  ;;  %v2317_v13 = vadd.f32 %v2316_v10, %v2315_v6 }
0x11ea   : > { %v2323_v12 = vrot.slane %v2322_v11, 1 }
0x11ec   : > { %v2324_v56 = vadd.f32 %v2323_v12, %v2322_v11 }
0x11ee   : > { %v2339_v14 = vsel %vm2338_vm9, %v2324_v56, %v2317_v13 }
0x11ef   : > { %2793 = vmatmul.mubr.msk.f32.vlgmr.msra.gmra.mrb[2].mxu1 %vm931_vm2, %v2339_v14 }
0x12c2   : > { %v2408_v15 = vpop.f32.mrb[2].mxu1 }
0x12c3   : > { %v2409_v16 = vadd.f32 %v2582_v55, %v2408_v15  ;;  %v2794_v17 = vpop.f32.mrb[3].mxu1 }
0x12c5   : > { %2413 = vst.msk [vmem:[#allocation4] sm:$0x3] %vm2412_vm10, %v2409_v16 }
0x12c6 PF: > { %p2869_p6 = scmp.eq.s32.totalorder %s3107_s21, 1  ;;  %s2997_s28 = smov [#allocation4]  }
0x12c7   : > { %s2421_s30 = sshll.u32 %s2997_s28, 4  ;;  %s2422_s30 = int_to_ptr.vmem [resolvable:$true] %s2421_s30 }
0x12c8   : > { %s2946_s27 = scalar_lea.vmem %s2422_s30, 32  ;;  %p2953_p10 = scmp.lt.s32.totalorder %s2422_s30, %s2422_s30 }
0x12c9   : > { %p2947_p7 = scmp.ne.s32.totalorder %s2422_s30, %s2946_s27  ;;  %p2954_p11 = scmp.lt.s32.totalorder %s2946_s27, %s2946_s27 }
0x12cb   : > { %p2948_p8 = pnand %p2947_p7, %p2869_p6  ;;  %p2955_p12 = por %p2954_p11, %p2953_p10 }
0x12cd   : > { %p2949_p9 = pneg %p2948_p8 }
0x12cf   : > { %p2956_p13 = pnand %p2955_p12, %p2949_p9 }
0x12d1   : > { %2959 = shalt.err (!%p2956_p13)
}
0x12d2   : > { %s3498_s24 = sld [smem:[#allocation15_spill]] }
0x12d8   : > { %s2960_s26 = scalar_lea.hbm %s3498_s24, 32 }
0x12d9   : > { %p2961_p0 = scmp.ne.s32.totalorder %s3498_s24, %s2960_s26  ;;  %p2966_p3 = scmp.lt.u32.totalorder %s2960_s26, %s3498_s24 }
0x12db   : > { %p2962_p1 = pnand %p2961_p0, %p2869_p6 }
0x12dd   : > { %p2963_p2 = pneg %p2962_p1 }
0x12df   : > { %p2968_p4 = pnand %p2966_p3, %p2963_p2 }
0x12e1   : > { %2971 = shalt.err (!%p2968_p4)
}
0x12e2   : > { %2866 = dma.vmem_to_hbm [thread:$0]  (%p2869_p6), %s2422_s30, 32, %s3498_s24, [#allocation5]  }
0x12e3   : > { %2977 = dma.done.wait (%p2869_p6), [#allocation5], 32  }
0x12e4   : > { %2979 = vsyncadd (%p2869_p6), [#allocation5], 4294967264 }
0x12e5 PF: > { %s3499_s5 = sld [smem:[#allocation7_spill]] }
0x12eb   : > { %s33_s20 = sadd.s32 1, %s3499_s5  }
0x12ec   : > { %p30_p5 = scmp.ge.s32.totalorder %s33_s20, 4  }
0x12ee   :  { %32 = sbr.rel (!%p30_p5) target bundleno = 10 (0xa), region = 153 }
0x12f5   :  { %2440 = vsyncpa [#allocation5], 1 }
0x12f6   :  { %2442 = vsyncpa [#allocation5 + $0x1], 1 }

</bundles_post_ra>
